<compile_context>
chip_gen: v7x
topology: tpu7x:2x2x1
jax: 0.10.0
libtpu: 0.0.40
codegen_flags: <defaults>
</compile_context>

<pallas_src>
import functools

import jax
import jax.numpy as jnp
from jax import lax
from jax.experimental import pallas as pl
from jax.experimental.pallas import tpu as pltpu

_EPS = 1e-5
_INV_SQRT2 = 0.7071067811865476
_INV_1414 = 1.0 / 1.414


# ----------------------------- Pallas kernel ----------------------------------

def _stage_kernel(x_ref, w_ref, bias_ref, gamma_ref, beta_ref, proj_ref, *rest,
                  N, H, W, Cin, Cout, has_residual):
    """Fused 3x3 conv + BatchNorm (train stats) + GELU (+ residual) for a whole batch.

    x_ref    : (N, H, W*Cin)           activations, lane-dense layout
    w_ref    : (3*W*Cin, W*Cout)       K-stacked banded conv weights (ky-major)
    bias_ref : (1, W*Cout)             conv bias tiled over w
    gamma_ref, beta_ref : (1, W*Cout)  BN affine params tiled over w
    proj_ref : (W*Cout, W*Cout)        per-channel averaging projector (incl. 1/count)
    [res_ref]: (N, H, W*Cout)          residual to fuse (optional)
    o_ref    : (N, H, W*Cout)
    slab_ref : (N, H, 3*W*Cin)         VMEM scratch: K-stacked LHS slab
    """
    if has_residual:
        res_ref, o_ref, slab_ref = rest
    else:
        o_ref, slab_ref = rest

    WC = W * Cin
    L = W * Cout

    # --- assemble the K-stacked LHS slab once (ky=0: row h-1, ky=1: h, ky=2: h+1) ---
    zero_row = jnp.zeros((N, 1, WC), dtype=x_ref.dtype)
    # ky = 0 band (reads row h-1; top halo row is zero)
    slab_ref[:, 0:1, 0:WC] = zero_row
    slab_ref[:, 1:H, 0:WC] = x_ref[:, 0:H - 1, :]
    # ky = 1 band (center)
    slab_ref[:, :, WC:2 * WC] = x_ref[...]
    # ky = 2 band (reads row h+1; bottom halo row is zero)
    slab_ref[:, 0:H - 1, 2 * WC:3 * WC] = x_ref[:, 1:H, :]
    slab_ref[:, H - 1:H, 2 * WC:3 * WC] = zero_row

    # --- conv as ONE MXU matmul (M = N*H, K = 3*W*Cin, Ncols = W*Cout), f32 acc ---
    slab = slab_ref[...].reshape(N * H, 3 * WC)
    y = jnp.dot(slab, w_ref[...], preferred_element_type=jnp.float32) + bias_ref[...]

    # --- BatchNorm2d, training-mode batch statistics over (N, H, W) ---
    proj = proj_ref[...]                                               # (L, L) f32
    mean_l = jnp.dot(jnp.sum(y, axis=0, keepdims=True), proj,
                     preferred_element_type=jnp.float32)               # (1, L)
    yc = y - mean_l
    var_l = jnp.dot(jnp.sum(yc * yc, axis=0, keepdims=True), proj,
                    preferred_element_type=jnp.float32)                # (1, L)
    inv_std_l = lax.rsqrt(var_l + _EPS)                                # EUP
    z = yc * (gamma_ref[...] * inv_std_l) + beta_ref[...]

    # --- exact (erf) GELU, matching nn.GELU() default ---
    g = 0.5 * z * (1.0 + lax.erf(z * _INV_SQRT2))

    if has_residual:
        r = res_ref[...].reshape(N * H, L).astype(jnp.float32)
        g = (g + r) * _INV_1414

    o_ref[...] = g.reshape(N, H, L).astype(o_ref.dtype)


# ----------------------------- weight preprocessing ----------------------------

def _build_banded_weight(w_oihw, W):
    """(Cout, Cin, 3, 3) conv weight -> (3*W*Cin, W*Cout) K-stacked banded weight.

    band_ky[wp*Cin + ci, w*Cout + co] = w[co, ci, ky, wp - w + 1] for |wp - w| <= 1,
    stacked ky-major along K.  Out-of-range kx taps only ever hit the zero padding,
    so they are dropped, making the width halo implicit in the weight matrix.
    """
    Cout, Cin, KH, KW = w_oihw.shape
    wt = jnp.transpose(w_oihw.astype(jnp.float32), (2, 3, 1, 0))   # (ky, kx, Cin, Cout)
    bands = []
    for ky in range(KH):
        band = jnp.zeros((W * Cin, W * Cout), jnp.float32)
        for kx in range(KW):
            shift = jnp.eye(W, k=1 - kx, dtype=jnp.float32)        # out col w <- in col w+kx-1
            band = band + jnp.einsum("ab,ij->aibj", shift, wt[ky, kx]).reshape(
                W * Cin, W * Cout)
        bands.append(band)
    return jnp.concatenate(bands, axis=0)                          # (3*W*Cin, W*Cout)


# ----------------------------- Pallas wrapper -----------------------------------

def _conv_bn_gelu_stage(x_l, w_oihw, b, gamma, beta, residual_l=None,
                        compute_dtype=jnp.float32):
    """One fused (conv3x3 -> BN(train) -> GELU [-> +res, /1.414]) stage.

    x_l: (N, H, W*Cin) lane-dense activations.  Returns (N, H, W*Cout).
    """
    N, H, WC = x_l.shape
    Cout, Cin, KH, KW = w_oihw.shape
    assert KH == 3 and KW == 3 and WC % Cin == 0
    W = WC // Cin
    L = W * Cout
    K = 3 * WC

    w_stack = _build_banded_weight(w_oihw, W).astype(compute_dtype)    # (K, L)
    bias_l = jnp.tile(b.astype(jnp.float32), W).reshape(1, L)
    gamma_l = jnp.tile(gamma.astype(jnp.float32), W).reshape(1, L)
    beta_l = jnp.tile(beta.astype(jnp.float32), W).reshape(1, L)
    # Per-channel averaging projector: proj[i, j] = 1/(N*H*W) iff lane i and lane j
    # carry the same output channel.  rowsum @ proj == per-channel mean broadcast
    # back to lane space in ONE matmul.
    sel = jnp.tile(jnp.eye(Cout, dtype=jnp.float32), (W, 1))           # (L, Cout)
    proj = jnp.dot(sel, sel.T) * (1.0 / float(N * H * W))              # (L, L)

    inputs = [x_l.astype(compute_dtype), w_stack, bias_l, gamma_l, beta_l, proj]
    in_specs = [
        pl.BlockSpec((N, H, WC), lambda i: (0, 0, 0)),
        pl.BlockSpec((K, L), lambda i: (0, 0)),
        pl.BlockSpec((1, L), lambda i: (0, 0)),
        pl.BlockSpec((1, L), lambda i: (0, 0)),
        pl.BlockSpec((1, L), lambda i: (0, 0)),
        pl.BlockSpec((L, L), lambda i: (0, 0)),
    ]
    has_residual = residual_l is not None
    if has_residual:
        inputs.append(residual_l.astype(compute_dtype))
        in_specs.append(pl.BlockSpec((N, H, L), lambda i: (0, 0, 0)))

    kernel = functools.partial(_stage_kernel, N=N, H=H, W=W, Cin=Cin, Cout=Cout,
                               has_residual=has_residual)

    return pl.pallas_call(
        kernel,
        out_shape=jax.ShapeDtypeStruct((N, H, L), compute_dtype),
        grid=(1,),   # whole batch per step: train-mode BN needs full-batch stats
        in_specs=in_specs,
        out_specs=pl.BlockSpec((N, H, L), lambda i: (0, 0, 0)),
        scratch_shapes=[pltpu.VMEM((N, H, K), compute_dtype)],
        compiler_params=pltpu.CompilerParams(
            dimension_semantics=("arbitrary",),
            vmem_limit_bytes=64 * 1024 * 1024),
    )(*inputs)


# ----------------------------- ConvBlock forward --------------------------------

def conv_block_forward_lane_dense(params, x_l, in_chans, residual=False,
                                  compute_dtype=jnp.float32):
    """ConvBlock on lane-dense (N, H, W*C) activations; keeps the layout end-to-end
    so stacked blocks never pay NCHW<->lane-dense relayout passes."""
    x1_l = _conv_bn_gelu_stage(x_l, params["w1"], params["b1"], params["g1"],
                               params["be1"], compute_dtype=compute_dtype)
    if residual:
        out_chans = params["w1"].shape[0]
        res_l = x_l if in_chans == out_chans else x1_l
        return _conv_bn_gelu_stage(x1_l, params["w2"], params["b2"], params["g2"],
                                   params["be2"], residual_l=res_l,
                                   compute_dtype=compute_dtype)
    return _conv_bn_gelu_stage(x1_l, params["w2"], params["b2"], params["g2"],
                               params["be2"], compute_dtype=compute_dtype)


def conv_block_forward(params, x_nchw, residual=False, compute_dtype=jnp.float32):
    """Pallas ConvBlock.forward.  Input/output are NCHW like PyTorch.

    The NCHW<->lane-dense transposes below exist only to match the PyTorch API at
    the boundary; a model built from these blocks should call
    conv_block_forward_lane_dense and stay in (N, H, W*C) layout throughout.
    """
    x = x_nchw.astype(jnp.float32)
    N, Cin, H, W = x.shape
    Cout = params["w1"].shape[0]
    x_l = jnp.transpose(x, (0, 2, 3, 1)).reshape(N, H, W * Cin)
    out_l = conv_block_forward_lane_dense(params, x_l, Cin, residual=residual,
                                          compute_dtype=compute_dtype)
    out = out_l.reshape(N, H, W, Cout)
    return jnp.transpose(out, (0, 3, 1, 2))   # back to NCHW


# ----------------------------- pure-JAX reference -------------------------------

def _ref_conv_bn_gelu(x_nchw, w, b, gamma, beta):
    y = lax.conv_general_dilated(
        x_nchw, w, window_strides=(1, 1), padding=((1, 1), (1, 1)),
        dimension_numbers=("NCHW", "OIHW", "NCHW"))
    y = y + b[None, :, None, None]
    mean = jnp.mean(y, axis=(0, 2, 3), keepdims=True)
    var = jnp.mean(jnp.square(y - mean), axis=(0, 2, 3), keepdims=True)
    yhat = (y - mean) / jnp.sqrt(var + _EPS)
    y = gamma[None, :, None, None] * yhat + beta[None, :, None, None]
    return jax.nn.gelu(y, approximate=False)


def conv_block_reference(params, x_nchw, residual=False):
    x = x_nchw.astype(jnp.float32)
    x1 = _ref_conv_bn_gelu(x, params["w1"], params["b1"], params["g1"], params["be1"])
    x2 = _ref_conv_bn_gelu(x1, params["w2"], params["b2"], params["g2"], params["be2"])
    if residual:
        out = (x + x2) if x.shape[1] == x2.shape[1] else (x1 + x2)
        return out / 1.414
    return x2


# ----------------------------------- main ----------------------------------------

if __name__ == "__main__":
    N, H, W = 2, 16, 16
    key = jax.random.PRNGKey(0)

    def make_params(k, cin, cout):
        k1, k2, k3, k4 = jax.random.split(k, 4)
        return {
            "w1": 0.1 * jax.random.normal(k1, (cout, cin, 3, 3), jnp.float32),
            "b1": 0.1 * jax.random.normal(k2, (cout,), jnp.float32),
            "w2": 0.1 * jax.random.normal(k3, (cout, cout, 3, 3), jnp.float32),
            "b2": 0.1 * jax.random.normal(k4, (cout,), jnp.float32),
            "g1": jnp.ones((cout,), jnp.float32),
            "be1": jnp.zeros((cout,), jnp.float32),
            "g2": jnp.ones((cout,), jnp.float32),
            "be2": jnp.zeros((cout,), jnp.float32),
        }

    fwd = jax.jit(conv_block_forward, static_argnames=("residual", "compute_dtype"))

    # (in != out chans) exercises the x1 + x2 residual path,
    # (in == out chans) exercises the x + x2 residual path.
    for cin, cout in ((4, 8), (8, 8)):
        key, kp, kx = jax.random.split(key, 3)
        params = make_params(kp, cin, cout)
        x = jax.random.normal(kx, (N, cin, H, W), jnp.float32)
        for residual in (False, True):
            out = jax.block_until_ready(fwd(params, x, residual=residual))
            ref = jax.block_until_ready(conv_block_reference(params, x, residual=residual))
            assert out.shape == ref.shape, (out.shape, ref.shape)
            assert jnp.allclose(out, ref, atol=1e-3, rtol=1e-3), (
                f"mismatch cin={cin} cout={cout} residual={residual}: "
                f"max abs err {jnp.max(jnp.abs(out - ref))}")

    # bf16 matmul-operand / bf16-intermediate mode (f32 MXU accumulation): halves
    # HBM/VMEM/DMA bytes and doubles MXU rate; checked at a looser tolerance
    # appropriate for bf16 rounding of inputs/intermediates.
    out_bf = jax.block_until_ready(
        fwd(params, x, residual=True, compute_dtype=jnp.bfloat16))
    ref = conv_block_reference(params, x, residual=True)
    assert jnp.allclose(out_bf.astype(jnp.float32), ref, atol=5e-2, rtol=5e-2), (
        f"bf16 mismatch: max abs err "
        f"{jnp.max(jnp.abs(out_bf.astype(jnp.float32) - ref))}")

    print("KERNEL_OK")
</pallas_src>

<mosaic_0001>
module attributes {stable_mosaic.version = 11 : i64} {
  func.func @_stage_kernel(%arg0: i32, %arg1: memref<2x16x64xf32, #tpu.memory_space<vmem>>, %arg2: memref<192x128xf32, #tpu.memory_space<vmem>>, %arg3: memref<1x128xf32, #tpu.memory_space<vmem>>, %arg4: memref<1x128xf32, #tpu.memory_space<vmem>>, %arg5: memref<1x128xf32, #tpu.memory_space<vmem>>, %arg6: memref<128x128xf32, #tpu.memory_space<vmem>>, %arg7: memref<2x16x128xf32, #tpu.memory_space<vmem>>, %arg8: memref<2x16x192xf32, #tpu.memory_space<vmem>>) attributes {dimension_semantics = [#tpu.dimension_semantics<arbitrary>], iteration_bounds = array<i64: 1>, scalar_prefetch = 0 : i64, scratch_operands = 1 : i64, tpu.core_type = #tpu.core_type<tc>, window_params = [{pipeline_mode = #tpu.pipeline_mode<synchronous>, transform_indices = @transform_0, window_bounds = array<i64: 2, 16, 64>}, {pipeline_mode = #tpu.pipeline_mode<synchronous>, transform_indices = @transform_1, window_bounds = array<i64: 192, 128>}, {pipeline_mode = #tpu.pipeline_mode<synchronous>, transform_indices = @transform_2, window_bounds = array<i64: 1, 128>}, {pipeline_mode = #tpu.pipeline_mode<synchronous>, transform_indices = @transform_3, window_bounds = array<i64: 1, 128>}, {pipeline_mode = #tpu.pipeline_mode<synchronous>, transform_indices = @transform_4, window_bounds = array<i64: 1, 128>}, {pipeline_mode = #tpu.pipeline_mode<synchronous>, transform_indices = @transform_5, window_bounds = array<i64: 128, 128>}, {pipeline_mode = #tpu.pipeline_mode<synchronous>, transform_indices = @transform_6, window_bounds = array<i64: 2, 16, 128>}]} {
    %cst = arith.constant 0.000000e+00 : f32
    %0 = vector.broadcast %cst : f32 to vector<2x1x64xf32>
    %c0 = arith.constant 0 : index
    %c0_0 = arith.constant 0 : index
    %c0_1 = arith.constant 0 : index
    %1 = vector.load %arg8[%c0, %c0_0, %c0_1] : memref<2x16x192xf32, #tpu.memory_space<vmem>>, vector<2x1x64xf32>
    tpu.vector_store %arg8[%c0, %c0_0, %c0_1], %0 {strides = array<i32>} : memref<2x16x192xf32, #tpu.memory_space<vmem>>, vector<2x1x64xf32>,
    %c0_2 = arith.constant 0 : index
    %c0_3 = arith.constant 0 : index
    %c0_4 = arith.constant 0 : index
    %2 = vector.load %arg1[%c0_2, %c0_3, %c0_4] : memref<2x16x64xf32, #tpu.memory_space<vmem>>, vector<2x15x64xf32>
    %c0_5 = arith.constant 0 : index
    %c1 = arith.constant 1 : index
    %c0_6 = arith.constant 0 : index
    %3 = vector.load %arg8[%c0_5, %c1, %c0_6] : memref<2x16x192xf32, #tpu.memory_space<vmem>>, vector<2x15x64xf32>
    tpu.vector_store %arg8[%c0_5, %c1, %c0_6], %2 {strides = array<i32>} : memref<2x16x192xf32, #tpu.memory_space<vmem>>, vector<2x15x64xf32>,
    %c0_7 = arith.constant 0 : index
    %c0_8 = arith.constant 0 : index
    %c0_9 = arith.constant 0 : index
    %4 = vector.load %arg1[%c0_7, %c0_8, %c0_9] : memref<2x16x64xf32, #tpu.memory_space<vmem>>, vector<2x16x64xf32>
    %c0_10 = arith.constant 0 : index
    %c0_11 = arith.constant 0 : index
    %c64 = arith.constant 64 : index
    %5 = vector.load %arg8[%c0_10, %c0_11, %c64] : memref<2x16x192xf32, #tpu.memory_space<vmem>>, vector<2x16x64xf32>
    tpu.vector_store %arg8[%c0_10, %c0_11, %c64], %4 {strides = array<i32>} : memref<2x16x192xf32, #tpu.memory_space<vmem>>, vector<2x16x64xf32>,
    %c0_12 = arith.constant 0 : index
    %c1_13 = arith.constant 1 : index
    %c0_14 = arith.constant 0 : index
    %6 = vector.load %arg1[%c0_12, %c1_13, %c0_14] : memref<2x16x64xf32, #tpu.memory_space<vmem>>, vector<2x15x64xf32>
    %c0_15 = arith.constant 0 : index
    %c0_16 = arith.constant 0 : index
    %c128 = arith.constant 128 : index
    %7 = vector.load %arg8[%c0_15, %c0_16, %c128] : memref<2x16x192xf32, #tpu.memory_space<vmem>>, vector<2x15x64xf32>
    tpu.vector_store %arg8[%c0_15, %c0_16, %c128], %6 {strides = array<i32>} : memref<2x16x192xf32, #tpu.memory_space<vmem>>, vector<2x15x64xf32>,
    %c0_17 = arith.constant 0 : index
    %c15 = arith.constant 15 : index
    %c128_18 = arith.constant 128 : index
    %8 = vector.load %arg8[%c0_17, %c15, %c128_18] : memref<2x16x192xf32, #tpu.memory_space<vmem>>, vector<2x1x64xf32>
    tpu.vector_store %arg8[%c0_17, %c15, %c128_18], %0 {strides = array<i32>} : memref<2x16x192xf32, #tpu.memory_space<vmem>>, vector<2x1x64xf32>,
    %c0_19 = arith.constant 0 : index
    %c0_20 = arith.constant 0 : index
    %c0_21 = arith.constant 0 : index
    %9 = vector.load %arg8[%c0_19, %c0_20, %c0_21] : memref<2x16x192xf32, #tpu.memory_space<vmem>>, vector<2x16x192xf32>
    %10 = vector.shape_cast %9 : vector<2x16x192xf32> to vector<32x192xf32>
    %c0_22 = arith.constant 0 : index
    %c0_23 = arith.constant 0 : index
    %11 = vector.load %arg2[%c0_22, %c0_23] : memref<192x128xf32, #tpu.memory_space<vmem>>, vector<192x128xf32>
    %cst_24 = arith.constant dense<0.000000e+00> : vector<32x128xf32>
    %12 = tpu.matmul %10, %11, %cst_24 {dimension_numbers = #tpu.dot_dimension_numbers<[1], [0], [0], [1], [0, 0, 1, 1], [], []>} : vector<32x192xf32>, vector<192x128xf32>, vector<32x128xf32> -> vector<32x128xf32>
    %c0_25 = arith.constant 0 : index
    %c0_26 = arith.constant 0 : index
    %13 = vector.load %arg3[%c0_25, %c0_26] : memref<1x128xf32, #tpu.memory_space<vmem>>, vector<1x128xf32>
    %14 = vector.broadcast %13 : vector<1x128xf32> to vector<32x128xf32>
    %15 = arith.addf %12, %14 : vector<32x128xf32>
    %c0_27 = arith.constant 0 : index
    %c0_28 = arith.constant 0 : index
    %16 = vector.load %arg6[%c0_27, %c0_28] : memref<128x128xf32, #tpu.memory_space<vmem>>, vector<128x128xf32>
    %cst_29 = arith.constant dense<0.000000e+00> : vector<128xf32>
    %17 = vector.multi_reduction <add>, %15, %cst_29 [0] : vector<32x128xf32> to vector<128xf32>
    %18 = vector.shape_cast %17 : vector<128xf32> to vector<1x128xf32>
    %cst_30 = arith.constant dense<0.000000e+00> : vector<1x128xf32>
    %19 = tpu.matmul %18, %16, %cst_30 {dimension_numbers = #tpu.dot_dimension_numbers<[1], [0], [0], [1], [0, 0, 1, 1], [], []>} : vector<1x128xf32>, vector<128x128xf32>, vector<1x128xf32> -> vector<1x128xf32>
    %20 = vector.broadcast %19 : vector<1x128xf32> to vector<32x128xf32>
    %21 = arith.subf %15, %20 : vector<32x128xf32>
    %22 = arith.mulf %21, %21 : vector<32x128xf32>
    %cst_31 = arith.constant dense<0.000000e+00> : vector<128xf32>
    %23 = vector.multi_reduction <add>, %22, %cst_31 [0] : vector<32x128xf32> to vector<128xf32>
    %24 = vector.shape_cast %23 : vector<128xf32> to vector<1x128xf32>
    %cst_32 = arith.constant dense<0.000000e+00> : vector<1x128xf32>
    %25 = tpu.matmul %24, %16, %cst_32 {dimension_numbers = #tpu.dot_dimension_numbers<[1], [0], [0], [1], [0, 0, 1, 1], [], []>} : vector<1x128xf32>, vector<128x128xf32>, vector<1x128xf32> -> vector<1x128xf32>
    %cst_33 = arith.constant 9.99999974E-6 : f32
    %26 = vector.broadcast %cst_33 : f32 to vector<1x128xf32>
    %27 = arith.addf %25, %26 : vector<1x128xf32>
    %28 = math.rsqrt %27 : vector<1x128xf32>
    %c0_34 = arith.constant 0 : index
    %c0_35 = arith.constant 0 : index
    %29 = vector.load %arg4[%c0_34, %c0_35] : memref<1x128xf32, #tpu.memory_space<vmem>>, vector<1x128xf32>
    %30 = arith.mulf %29, %28 : vector<1x128xf32>
    %31 = vector.broadcast %30 : vector<1x128xf32> to vector<32x128xf32>
    %32 = arith.mulf %21, %31 : vector<32x128xf32>
    %c0_36 = arith.constant 0 : index
    %c0_37 = arith.constant 0 : index
    %33 = vector.load %arg5[%c0_36, %c0_37] : memref<1x128xf32, #tpu.memory_space<vmem>>, vector<1x128xf32>
    %34 = vector.broadcast %33 : vector<1x128xf32> to vector<32x128xf32>
    %35 = arith.addf %32, %34 : vector<32x128xf32>
    %cst_38 = arith.constant 5.000000e-01 : f32
    %36 = vector.broadcast %cst_38 : f32 to vector<32x128xf32>
    %37 = arith.mulf %36, %35 : vector<32x128xf32>
    %cst_39 = arith.constant 0.707106769 : f32
    %38 = vector.broadcast %cst_39 : f32 to vector<32x128xf32>
    %39 = arith.mulf %35, %38 : vector<32x128xf32>
    %40 = math.erf %39 : vector<32x128xf32>
    %cst_40 = arith.constant 1.000000e+00 : f32
    %41 = vector.broadcast %cst_40 : f32 to vector<32x128xf32>
    %42 = arith.addf %41, %40 : vector<32x128xf32>
    %43 = arith.mulf %37, %42 : vector<32x128xf32>
    %44 = vector.shape_cast %43 : vector<32x128xf32> to vector<2x16x128xf32>
    %c0_41 = arith.constant 0 : index
    %c0_42 = arith.constant 0 : index
    %c0_43 = arith.constant 0 : index
    %45 = vector.load %arg7[%c0_41, %c0_42, %c0_43] : memref<2x16x128xf32, #tpu.memory_space<vmem>>, vector<2x16x128xf32>
    tpu.vector_store %arg7[%c0_41, %c0_42, %c0_43], %44 {strides = array<i32>} : memref<2x16x128xf32, #tpu.memory_space<vmem>>, vector<2x16x128xf32>,
    return
  }
  func.func @transform_0(%arg0: i32) -> (i32, i32, i32) {
    %c0_i32 = arith.constant 0 : i32
    %c0_i32_0 = arith.constant 0 : i32
    %c0_i32_1 = arith.constant 0 : i32
    %c0_i32_2 = arith.constant 0 : i32
    return %c0_i32, %c0_i32_0, %c0_i32_1 : i32, i32, i32
  }
  func.func @transform_1(%arg0: i32) -> (i32, i32) {
    %c0_i32 = arith.constant 0 : i32
    %c0_i32_0 = arith.constant 0 : i32
    %c0_i32_1 = arith.constant 0 : i32
    return %c0_i32, %c0_i32_0 : i32, i32
  }
  func.func @transform_2(%arg0: i32) -> (i32, i32) {
    %c0_i32 = arith.constant 0 : i32
    %c0_i32_0 = arith.constant 0 : i32
    %c0_i32_1 = arith.constant 0 : i32
    return %c0_i32, %c0_i32_0 : i32, i32
  }
  func.func @transform_3(%arg0: i32) -> (i32, i32) {
    %c0_i32 = arith.constant 0 : i32
    %c0_i32_0 = arith.constant 0 : i32
    %c0_i32_1 = arith.constant 0 : i32
    return %c0_i32, %c0_i32_0 : i32, i32
  }
  func.func @transform_4(%arg0: i32) -> (i32, i32) {
    %c0_i32 = arith.constant 0 : i32
    %c0_i32_0 = arith.constant 0 : i32
    %c0_i32_1 = arith.constant 0 : i32
    return %c0_i32, %c0_i32_0 : i32, i32
  }
  func.func @transform_5(%arg0: i32) -> (i32, i32) {
    %c0_i32 = arith.constant 0 : i32
    %c0_i32_0 = arith.constant 0 : i32
    %c0_i32_1 = arith.constant 0 : i32
    return %c0_i32, %c0_i32_0 : i32, i32
  }
  func.func @transform_6(%arg0: i32) -> (i32, i32, i32) {
    %c0_i32 = arith.constant 0 : i32
    %c0_i32_0 = arith.constant 0 : i32
    %c0_i32_1 = arith.constant 0 : i32
    %c0_i32_2 = arith.constant 0 : i32
    return %c0_i32, %c0_i32_0, %c0_i32_1 : i32, i32, i32
  }
}

module attributes {stable_mosaic.version = 11 : i64} {
  func.func @_stage_kernel(%arg0: i32, %arg1: memref<2x16x128xf32, #tpu.memory_space<vmem>>, %arg2: memref<384x128xf32, #tpu.memory_space<vmem>>, %arg3: memref<1x128xf32, #tpu.memory_space<vmem>>, %arg4: memref<1x128xf32, #tpu.memory_space<vmem>>, %arg5: memref<1x128xf32, #tpu.memory_space<vmem>>, %arg6: memref<128x128xf32, #tpu.memory_space<vmem>>, %arg7: memref<2x16x128xf32, #tpu.memory_space<vmem>>, %arg8: memref<2x16x384xf32, #tpu.memory_space<vmem>>) attributes {dimension_semantics = [#tpu.dimension_semantics<arbitrary>], iteration_bounds = array<i64: 1>, scalar_prefetch = 0 : i64, scratch_operands = 1 : i64, tpu.core_type = #tpu.core_type<tc>, window_params = [{pipeline_mode = #tpu.pipeline_mode<synchronous>, transform_indices = @transform_0, window_bounds = array<i64: 2, 16, 128>}, {pipeline_mode = #tpu.pipeline_mode<synchronous>, transform_indices = @transform_1, window_bounds = array<i64: 384, 128>}, {pipeline_mode = #tpu.pipeline_mode<synchronous>, transform_indices = @transform_2, window_bounds = array<i64: 1, 128>}, {pipeline_mode = #tpu.pipeline_mode<synchronous>, transform_indices = @transform_3, window_bounds = array<i64: 1, 128>}, {pipeline_mode = #tpu.pipeline_mode<synchronous>, transform_indices = @transform_4, window_bounds = array<i64: 1, 128>}, {pipeline_mode = #tpu.pipeline_mode<synchronous>, transform_indices = @transform_5, window_bounds = array<i64: 128, 128>}, {pipeline_mode = #tpu.pipeline_mode<synchronous>, transform_indices = @transform_6, window_bounds = array<i64: 2, 16, 128>}]} {
    %cst = arith.constant 0.000000e+00 : f32
    %0 = vector.broadcast %cst : f32 to vector<2x1x128xf32>
    %c0 = arith.constant 0 : index
    %c0_0 = arith.constant 0 : index
    %c0_1 = arith.constant 0 : index
    %1 = vector.load %arg8[%c0, %c0_0, %c0_1] : memref<2x16x384xf32, #tpu.memory_space<vmem>>, vector<2x1x128xf32>
    tpu.vector_store %arg8[%c0, %c0_0, %c0_1], %0 {strides = array<i32>} : memref<2x16x384xf32, #tpu.memory_space<vmem>>, vector<2x1x128xf32>,
    %c0_2 = arith.constant 0 : index
    %c0_3 = arith.constant 0 : index
    %c0_4 = arith.constant 0 : index
    %2 = vector.load %arg1[%c0_2, %c0_3, %c0_4] : memref<2x16x128xf32, #tpu.memory_space<vmem>>, vector<2x15x128xf32>
    %c0_5 = arith.constant 0 : index
    %c1 = arith.constant 1 : index
    %c0_6 = arith.constant 0 : index
    %3 = vector.load %arg8[%c0_5, %c1, %c0_6] : memref<2x16x384xf32, #tpu.memory_space<vmem>>, vector<2x15x128xf32>
    tpu.vector_store %arg8[%c0_5, %c1, %c0_6], %2 {strides = array<i32>} : memref<2x16x384xf32, #tpu.memory_space<vmem>>, vector<2x15x128xf32>,
    %c0_7 = arith.constant 0 : index
    %c0_8 = arith.constant 0 : index
    %c0_9 = arith.constant 0 : index
    %4 = vector.load %arg1[%c0_7, %c0_8, %c0_9] : memref<2x16x128xf32, #tpu.memory_space<vmem>>, vector<2x16x128xf32>
    %c0_10 = arith.constant 0 : index
    %c0_11 = arith.constant 0 : index
    %c128 = arith.constant 128 : index
    %5 = vector.load %arg8[%c0_10, %c0_11, %c128] : memref<2x16x384xf32, #tpu.memory_space<vmem>>, vector<2x16x128xf32>
    tpu.vector_store %arg8[%c0_10, %c0_11, %c128], %4 {strides = array<i32>} : memref<2x16x384xf32, #tpu.memory_space<vmem>>, vector<2x16x128xf32>,
    %c0_12 = arith.constant 0 : index
    %c1_13 = arith.constant 1 : index
    %c0_14 = arith.constant 0 : index
    %6 = vector.load %arg1[%c0_12, %c1_13, %c0_14] : memref<2x16x128xf32, #tpu.memory_space<vmem>>, vector<2x15x128xf32>
    %c0_15 = arith.constant 0 : index
    %c0_16 = arith.constant 0 : index
    %c256 = arith.constant 256 : index
    %7 = vector.load %arg8[%c0_15, %c0_16, %c256] : memref<2x16x384xf32, #tpu.memory_space<vmem>>, vector<2x15x128xf32>
    tpu.vector_store %arg8[%c0_15, %c0_16, %c256], %6 {strides = array<i32>} : memref<2x16x384xf32, #tpu.memory_space<vmem>>, vector<2x15x128xf32>,
    %c0_17 = arith.constant 0 : index
    %c15 = arith.constant 15 : index
    %c256_18 = arith.constant 256 : index
    %8 = vector.load %arg8[%c0_17, %c15, %c256_18] : memref<2x16x384xf32, #tpu.memory_space<vmem>>, vector<2x1x128xf32>
    tpu.vector_store %arg8[%c0_17, %c15, %c256_18], %0 {strides = array<i32>} : memref<2x16x384xf32, #tpu.memory_space<vmem>>, vector<2x1x128xf32>,
    %c0_19 = arith.constant 0 : index
    %c0_20 = arith.constant 0 : index
    %c0_21 = arith.constant 0 : index
    %9 = vector.load %arg8[%c0_19, %c0_20, %c0_21] : memref<2x16x384xf32, #tpu.memory_space<vmem>>, vector<2x16x384xf32>
    %10 = vector.shape_cast %9 : vector<2x16x384xf32> to vector<32x384xf32>
    %c0_22 = arith.constant 0 : index
    %c0_23 = arith.constant 0 : index
    %11 = vector.load %arg2[%c0_22, %c0_23] : memref<384x128xf32, #tpu.memory_space<vmem>>, vector<384x128xf32>
    %cst_24 = arith.constant dense<0.000000e+00> : vector<32x128xf32>
    %12 = tpu.matmul %10, %11, %cst_24 {dimension_numbers = #tpu.dot_dimension_numbers<[1], [0], [0], [1], [0, 0, 1, 1], [], []>} : vector<32x384xf32>, vector<384x128xf32>, vector<32x128xf32> -> vector<32x128xf32>
    %c0_25 = arith.constant 0 : index
    %c0_26 = arith.constant 0 : index
    %13 = vector.load %arg3[%c0_25, %c0_26] : memref<1x128xf32, #tpu.memory_space<vmem>>, vector<1x128xf32>
    %14 = vector.broadcast %13 : vector<1x128xf32> to vector<32x128xf32>
    %15 = arith.addf %12, %14 : vector<32x128xf32>
    %c0_27 = arith.constant 0 : index
    %c0_28 = arith.constant 0 : index
    %16 = vector.load %arg6[%c0_27, %c0_28] : memref<128x128xf32, #tpu.memory_space<vmem>>, vector<128x128xf32>
    %cst_29 = arith.constant dense<0.000000e+00> : vector<128xf32>
    %17 = vector.multi_reduction <add>, %15, %cst_29 [0] : vector<32x128xf32> to vector<128xf32>
    %18 = vector.shape_cast %17 : vector<128xf32> to vector<1x128xf32>
    %cst_30 = arith.constant dense<0.000000e+00> : vector<1x128xf32>
    %19 = tpu.matmul %18, %16, %cst_30 {dimension_numbers = #tpu.dot_dimension_numbers<[1], [0], [0], [1], [0, 0, 1, 1], [], []>} : vector<1x128xf32>, vector<128x128xf32>, vector<1x128xf32> -> vector<1x128xf32>
    %20 = vector.broadcast %19 : vector<1x128xf32> to vector<32x128xf32>
    %21 = arith.subf %15, %20 : vector<32x128xf32>
    %22 = arith.mulf %21, %21 : vector<32x128xf32>
    %cst_31 = arith.constant dense<0.000000e+00> : vector<128xf32>
    %23 = vector.multi_reduction <add>, %22, %cst_31 [0] : vector<32x128xf32> to vector<128xf32>
    %24 = vector.shape_cast %23 : vector<128xf32> to vector<1x128xf32>
    %cst_32 = arith.constant dense<0.000000e+00> : vector<1x128xf32>
    %25 = tpu.matmul %24, %16, %cst_32 {dimension_numbers = #tpu.dot_dimension_numbers<[1], [0], [0], [1], [0, 0, 1, 1], [], []>} : vector<1x128xf32>, vector<128x128xf32>, vector<1x128xf32> -> vector<1x128xf32>
    %cst_33 = arith.constant 9.99999974E-6 : f32
    %26 = vector.broadcast %cst_33 : f32 to vector<1x128xf32>
    %27 = arith.addf %25, %26 : vector<1x128xf32>
    %28 = math.rsqrt %27 : vector<1x128xf32>
    %c0_34 = arith.constant 0 : index
    %c0_35 = arith.constant 0 : index
    %29 = vector.load %arg4[%c0_34, %c0_35] : memref<1x128xf32, #tpu.memory_space<vmem>>, vector<1x128xf32>
    %30 = arith.mulf %29, %28 : vector<1x128xf32>
    %31 = vector.broadcast %30 : vector<1x128xf32> to vector<32x128xf32>
    %32 = arith.mulf %21, %31 : vector<32x128xf32>
    %c0_36 = arith.constant 0 : index
    %c0_37 = arith.constant 0 : index
    %33 = vector.load %arg5[%c0_36, %c0_37] : memref<1x128xf32, #tpu.memory_space<vmem>>, vector<1x128xf32>
    %34 = vector.broadcast %33 : vector<1x128xf32> to vector<32x128xf32>
    %35 = arith.addf %32, %34 : vector<32x128xf32>
    %cst_38 = arith.constant 5.000000e-01 : f32
    %36 = vector.broadcast %cst_38 : f32 to vector<32x128xf32>
    %37 = arith.mulf %36, %35 : vector<32x128xf32>
    %cst_39 = arith.constant 0.707106769 : f32
    %38 = vector.broadcast %cst_39 : f32 to vector<32x128xf32>
    %39 = arith.mulf %35, %38 : vector<32x128xf32>
    %40 = math.erf %39 : vector<32x128xf32>
    %cst_40 = arith.constant 1.000000e+00 : f32
    %41 = vector.broadcast %cst_40 : f32 to vector<32x128xf32>
    %42 = arith.addf %41, %40 : vector<32x128xf32>
    %43 = arith.mulf %37, %42 : vector<32x128xf32>
    %44 = vector.shape_cast %43 : vector<32x128xf32> to vector<2x16x128xf32>
    %c0_41 = arith.constant 0 : index
    %c0_42 = arith.constant 0 : index
    %c0_43 = arith.constant 0 : index
    %45 = vector.load %arg7[%c0_41, %c0_42, %c0_43] : memref<2x16x128xf32, #tpu.memory_space<vmem>>, vector<2x16x128xf32>
    tpu.vector_store %arg7[%c0_41, %c0_42, %c0_43], %44 {strides = array<i32>} : memref<2x16x128xf32, #tpu.memory_space<vmem>>, vector<2x16x128xf32>,
    return
  }
  func.func @transform_0(%arg0: i32) -> (i32, i32, i32) {
    %c0_i32 = arith.constant 0 : i32
    %c0_i32_0 = arith.constant 0 : i32
    %c0_i32_1 = arith.constant 0 : i32
    %c0_i32_2 = arith.constant 0 : i32
    return %c0_i32, %c0_i32_0, %c0_i32_1 : i32, i32, i32
  }
  func.func @transform_1(%arg0: i32) -> (i32, i32) {
    %c0_i32 = arith.constant 0 : i32
    %c0_i32_0 = arith.constant 0 : i32
    %c0_i32_1 = arith.constant 0 : i32
    return %c0_i32, %c0_i32_0 : i32, i32
  }
  func.func @transform_2(%arg0: i32) -> (i32, i32) {
    %c0_i32 = arith.constant 0 : i32
    %c0_i32_0 = arith.constant 0 : i32
    %c0_i32_1 = arith.constant 0 : i32
    return %c0_i32, %c0_i32_0 : i32, i32
  }
  func.func @transform_3(%arg0: i32) -> (i32, i32) {
    %c0_i32 = arith.constant 0 : i32
    %c0_i32_0 = arith.constant 0 : i32
    %c0_i32_1 = arith.constant 0 : i32
    return %c0_i32, %c0_i32_0 : i32, i32
  }
  func.func @transform_4(%arg0: i32) -> (i32, i32) {
    %c0_i32 = arith.constant 0 : i32
    %c0_i32_0 = arith.constant 0 : i32
    %c0_i32_1 = arith.constant 0 : i32
    return %c0_i32, %c0_i32_0 : i32, i32
  }
  func.func @transform_5(%arg0: i32) -> (i32, i32) {
    %c0_i32 = arith.constant 0 : i32
    %c0_i32_0 = arith.constant 0 : i32
    %c0_i32_1 = arith.constant 0 : i32
    return %c0_i32, %c0_i32_0 : i32, i32
  }
  func.func @transform_6(%arg0: i32) -> (i32, i32, i32) {
    %c0_i32 = arith.constant 0 : i32
    %c0_i32_0 = arith.constant 0 : i32
    %c0_i32_1 = arith.constant 0 : i32
    %c0_i32_2 = arith.constant 0 : i32
    return %c0_i32, %c0_i32_0, %c0_i32_1 : i32, i32, i32
  }
}

</mosaic_0001>

<bundles_post_ra>
// kernel: tile.43
= control target key start
LH: loop header
LB: loop body
LE: loop exit
PB: predicated region body
PF: predicated region fallthrough
CT: control target
= control target key end

     0   :  { %s28_s0 = inlined_call_operand.vmem [shape: f32[8], index: 0, kind: input, shape index: {}]   ;;  %s29_s1 = inlined_call_operand.vmem [shape: f32[16,8], index: 1, kind: output, shape index: {}]  }
   0x1   :  { %v4_v0 = vld [vmem:[%s28_s0] ss:$0 sm:$0xff] }
   0x2   :  { %5 = vst [vmem:[%s29_s1] sm:$0xff] %v4_v0  ;;  %8 = vst [vmem:[%s29_s1 + $0x8] sm:$0xff] %v4_v0 }

// kernel: tile.44
= control target key start
LH: loop header
LB: loop body
LE: loop exit
PB: predicated region body
PF: predicated region fallthrough
CT: control target
= control target key end

     0   :  { %s167_s10 = smov 120   ;;  %s168_s11 = smov 104   ;;  %vm4_vm0 = vcmask 64512   ;;  %s253_s0 = inlined_call_operand.vmem [shape: f32[16,8], index: 0, kind: input, shape index: {}]   ;;  %s254_s1 = inlined_call_operand.hbm [shape: f32[1,128], index: 1, kind: output, shape index: {}]  }
   0x1   :  { %v112_v0 = vld [vmem:[%s253_s0 + $0xf] sm:$0x1]   ;;  %v114_v1 = vld [vmem:[%s253_s0 + $0xd] sm:$0x1]   ;;  %v113_v2 = vld [vmem:[%s253_s0 + $0xe] sm:$0x1]  }
   0x2   :  { %8 = vrot.lane.b32.xlu0 %v112_v0, %s167_s10  ;;  %20 = vrot.lane.b32.xlu1 %v114_v1, %s168_s11  ;;  %v115_v3 = vld [vmem:[%s253_s0 + $0xc] sm:$0x1]   ;;  %s169_s16 = smov 112   ;;  %s170_s17 = smov 96   ;;  %v116_v4 = vld [vmem:[%s253_s0 + $0xb] sm:$0x1]  }
   0x3   :  { %v117_v5 = vld [vmem:[%s253_s0 + $0xa] sm:$0x1]   ;;  %v3_v6 = vld [vmem:[%s253_s0] sm:$0x1]  }
   0x6   :  { %14 = vrot.lane.b32.xlu0 %v113_v2, %s169_s16  ;;  %26 = vrot.lane.b32.xlu1 %v115_v3, %s170_s17 }
   0x7   :  { %2 = vsyncpa [#allocation1], 0  ;;  %s171_s24 = smov 88   ;;  %s172_s25 = smov 80   ;;  %5 = vst.msk [vmem:[#allocation2] sm:$0x1] %vm4_vm0, %v3_v6  }
   0x8   :  { %v118_v7 = vld [vmem:[%s253_s0 + $0x9] sm:$0x1]   ;;  %v119_v8 = vld [vmem:[%s253_s0 + $0x8] sm:$0x1]   ;;  %s173_s30 = smov 72   ;;  %s174_s2 = smov 64  }
   0x9   :  { %v120_v9 = vld [vmem:[%s253_s0 + $0x7] sm:$0x1]   ;;  %v121_v10 = vld [vmem:[%s253_s0 + $0x6] sm:$0x1]   ;;  %s175_s7 = smov 56   ;;  %s176_s8 = smov 48  }
   0xa   :  { %32 = vrot.lane.b32.xlu0 %v116_v4, %s171_s24  ;;  %38 = vrot.lane.b32.xlu1 %v117_v5, %s172_s25  ;;  %v122_v11 = vld [vmem:[%s253_s0 + $0x5] sm:$0x1]   ;;  %v123_v12 = vld [vmem:[%s253_s0 + $0x4] sm:$0x1]   ;;  %s177_s13 = smov 40   ;;  %s178_s14 = smov 32  }
   0xb   :  { %v124_v13 = vld [vmem:[%s253_s0 + $0x3] sm:$0x1]   ;;  %v125_v14 = vld [vmem:[%s253_s0 + $0x2] sm:$0x1]   ;;  %s179_s19 = smov 24   ;;  %s180_s20 = smov 16  }
   0xc   :  { %v126_v15 = vld [vmem:[%s253_s0 + $0x1] sm:$0x1]   ;;  %s181_s0 = smov 8   ;;  %vm10_vm1 = vcmask 1048512   ;;  %vm16_vm2 = vcmask 982912   ;;  %vm22_vm3 = vcmask 917312  }
   0xd   :  { %vm28_vm4 = vcmask 851712   ;;  %vm34_vm5 = vcmask 786112   ;;  %vm40_vm6 = vcmask 720512   ;;  %vm46_vm7 = vcmask 654912   ;;  %s182_s23 = smov [#allocation0]  }
   0xe   :  { %44 = vrot.lane.b32.xlu0 %v118_v7, %s173_s30  ;;  %50 = vrot.lane.b32.xlu1 %v119_v8, %s174_s2  ;;  %vm52_vm8 = vcmask 589312   ;;  %vm58_vm9 = vcmask 523712   ;;  %vm64_vm10 = vcmask 458112   ;;  %vm70_vm11 = vcmask 392512   ;;  %s106_s24 = sshll.u32 %s182_s23, 4  ;;  %s107_s24 = int_to_ptr.vmem [resolvable:$true] %s106_s24 }
   0xf   :  { %vm76_vm12 = vcmask 326912   ;;  %vm82_vm13 = vcmask 261312   ;;  %vm88_vm14 = vcmask 195712   ;;  %vm94_vm15 = vcmask 130112   ;;  %s143_s25 = scalar_lea.vmem %s107_s24, 16  ;;  %s147_s26 = scalar_lea.vmem %s107_s24, 32 }
  0x10   :  { %p144_p0 = scmp.ne.s32.totalorder %s107_s24, %s143_s25  ;;  %p148_p1 = scmp.lt.s32.totalorder %s107_s24, %s107_s24 }
  0x11   :  { %p149_p2 = scmp.lt.s32.totalorder %s147_s26, %s143_s25 }
  0x12   :  { %56 = vrot.lane.b32.xlu0 %v120_v9, %s175_s7  ;;  %62 = vrot.lane.b32.xlu1 %v121_v10, %s176_s8 }
  0x13   :  { %p150_p3 = por %p149_p2, %p148_p1 }
  0x15   :  { %p151_p4 = pnand %p150_p3, %p144_p0 }
  0x16   :  { %68 = vrot.lane.b32.xlu0 %v122_v11, %s177_s13  ;;  %74 = vrot.lane.b32.xlu1 %v123_v12, %s178_s14 }
  0x1a   :  { %80 = vrot.lane.b32.xlu0 %v124_v13, %s179_s19  ;;  %86 = vrot.lane.b32.xlu1 %v125_v14, %s180_s20 }
  0x1e   :  { %92 = vrot.lane.b32.xlu0 %v126_v15, %s181_s0 }
  0x74   :  { %v9_v16 = vpop.permute.xlu0 %8   ;;  %v21_v17 = vpop.permute.xlu1 %20  }
  0x75   :  { %11 = vst.msk [vmem:[#allocation2] sm:$0x1] %vm10_vm1, %v9_v16  }
  0x78   :  { %v15_v18 = vpop.permute.xlu0 %14   ;;  %v27_v19 = vpop.permute.xlu1 %26  }
  0x79   :  { %17 = vst.msk [vmem:[#allocation2] sm:$0x1] %vm16_vm2, %v15_v18  }
  0x7a   :  { %23 = vst.msk [vmem:[#allocation2] sm:$0x1] %vm22_vm3, %v21_v17  }
  0x7b   :  { %29 = vst.msk [vmem:[#allocation2] sm:$0x1] %vm28_vm4, %v27_v19  }
  0x7c   :  { %v33_v20 = vpop.permute.xlu0 %32   ;;  %v39_v21 = vpop.permute.xlu1 %38  }
  0x7d   :  { %35 = vst.msk [vmem:[#allocation2] sm:$0x1] %vm34_vm5, %v33_v20  }
  0x7e   :  { %41 = vst.msk [vmem:[#allocation2] sm:$0x1] %vm40_vm6, %v39_v21  }
  0x80   :  { %v45_v22 = vpop.permute.xlu0 %44   ;;  %v51_v23 = vpop.permute.xlu1 %50  }
  0x81   :  { %47 = vst.msk [vmem:[#allocation2] sm:$0x1] %vm46_vm7, %v45_v22  }
  0x82   :  { %53 = vst.msk [vmem:[#allocation2] sm:$0x1] %vm52_vm8, %v51_v23  }
  0x84   :  { %v57_v24 = vpop.permute.xlu0 %56   ;;  %v63_v25 = vpop.permute.xlu1 %62  }
  0x85   :  { %59 = vst.msk [vmem:[#allocation2] sm:$0x1] %vm58_vm9, %v57_v24  }
  0x86   :  { %65 = vst.msk [vmem:[#allocation2] sm:$0x1] %vm64_vm10, %v63_v25  }
  0x88   :  { %v69_v26 = vpop.permute.xlu0 %68   ;;  %v75_v27 = vpop.permute.xlu1 %74  }
  0x89   :  { %71 = vst.msk [vmem:[#allocation2] sm:$0x1] %vm70_vm11, %v69_v26  }
  0x8a   :  { %77 = vst.msk [vmem:[#allocation2] sm:$0x1] %vm76_vm12, %v75_v27  }
  0x8c   :  { %v81_v28 = vpop.permute.xlu0 %80   ;;  %v87_v29 = vpop.permute.xlu1 %86  }
  0x8d   :  { %83 = vst.msk [vmem:[#allocation2] sm:$0x1] %vm82_vm13, %v81_v28  }
  0x8e   :  { %89 = vst.msk [vmem:[#allocation2] sm:$0x1] %vm88_vm14, %v87_v29  }
  0x90   :  { %v93_v30 = vpop.permute.xlu0 %92  }
  0x91   :  { %95 = vst.msk [vmem:[#allocation2] sm:$0x1] %vm94_vm15, %v93_v30  }
  0x98   :  { %v99_v31 = vld [vmem:[#allocation2] sm:$0x1] }
  0x99   :  { %101 = vst [vmem:[#allocation0] sm:$0x1] %v99_v31 }
  0x9a   :  { %154 = shalt.err (!%p151_p4)
}
  0x9b   :  { %s155_s29 = scalar_lea.hbm %s254_s1, 16 }
  0x9c   :  { %p156_p5 = scmp.ne.s32.totalorder %s254_s1, %s155_s29  ;;  %p159_p6 = scmp.lt.u32.totalorder %s155_s29, %s254_s1 }
  0x9e   :  { %p161_p7 = pnand %p159_p6, %p156_p5 }
  0xa0   :  { %164 = shalt.err (!%p161_p7)
}
  0xa1   :  { %109 = dma.vmem_to_hbm [thread:$0]  %s107_s24, 16, %s254_s1, [#allocation1]  }
  0xa2   :  { %165 = dma.done.wait [#allocation1], 16  }
  0xa3   :  { %166 = vsyncadd [#allocation1], 4294967280 }
  0xa4   :  { %111 = vsyncpa [#allocation1], 1 }

// kernel: tile.63
= control target key start
LH: loop header
LB: loop body
LE: loop exit
PB: predicated region body
PF: predicated region fallthrough
CT: control target
= control target key end

     0   :  { %2 = vsyncpa [#allocation1], 0  ;;  %s47_s6 = smov [#allocation0]   ;;  %s76_s0 = inlined_call_operand.hbm [shape: f32[8], index: 0, kind: input, shape index: {}]   ;;  %s77_s1 = inlined_call_operand.vmem [shape: f32[16,8], index: 1, kind: output, shape index: {}]  }
   0x1   :  { %s9_s7 = sshll.u32 %s47_s6, 4  ;;  %s23_s10 = scalar_lea.hbm %s76_s0, 16  ;;  %s10_s7 = int_to_ptr.vmem [resolvable:$true] %s9_s7 }
   0x2   :  { %p24_p0 = scmp.ne.s32.totalorder %s76_s0, %s23_s10  ;;  %p27_p1 = scmp.lt.u32.totalorder %s23_s10, %s76_s0 }
   0x4   :  { %p29_p2 = pnand %p27_p1, %p24_p0 }
   0x6   :  { %32 = shalt.err (!%p29_p2)
}
   0x7   :  { %s33_s15 = scalar_lea.vmem %s10_s7, 16  ;;  %s37_s16 = scalar_lea.vmem %s10_s7, 32 }
   0x8   :  { %p34_p3 = scmp.ne.s32.totalorder %s10_s7, %s33_s15  ;;  %p38_p4 = scmp.lt.s32.totalorder %s10_s7, %s10_s7 }
   0x9   :  { %p39_p5 = scmp.lt.s32.totalorder %s37_s16, %s33_s15 }
   0xb   :  { %p40_p6 = por %p39_p5, %p38_p4 }
   0xd   :  { %p41_p7 = pnand %p40_p6, %p34_p3 }
   0xf   :  { %44 = shalt.err (!%p41_p7)
}
  0x10   :  { %12 = dma.hbm_to_vmem [thread:$0]  %s76_s0, 16, %s10_s7, [#allocation1]  }
  0x11   :  { %45 = dma.done.wait [#allocation1], 16  }
  0x12   :  { %46 = vsyncadd [#allocation1], 4294967280  ;;  %v16_v0 = vld [vmem:[#allocation0] ss:$0 sm:$0xff] }
  0x13   :  { %17 = vst [vmem:[%s77_s1] sm:$0xff] %v16_v0  ;;  %21 = vst [vmem:[%s77_s1 + $0x8] sm:$0xff] %v16_v0 }
  0x14   :  { %20 = vsyncpa [#allocation1], 1 }

// kernel: conv_block_forward.2
= control target key start
LH: loop header
LB: loop body
LE: loop exit
PB: predicated region body
PF: predicated region fallthrough
CT: control target
= control target key end

     0   :  { %11 = vsyncpa [#allocation4], 0  ;;  %s1146_s0 = inlined_call_operand.hbm [shape: f32[2,16,64], index: 0, kind: input, shape index: {}]   ;;  %s1147_s1 = inlined_call_operand.hbm [shape: f32[192,128], index: 1, kind: input, shape index: {}]   ;;  %s1148_s2 = inlined_call_operand.hbm [shape: f32[1,128], index: 2, kind: input, shape index: {}]   ;;  %s1149_s3 = inlined_call_operand.hbm [shape: f32[1,128], index: 3, kind: input, shape index: {}]   ;;  %s1150_s4 = inlined_call_operand.hbm [shape: f32[1,128], index: 4, kind: input, shape index: {}]   ;;  %s1151_s5 = inlined_call_operand.hbm [shape: f32[128,128], index: 5, kind: input, shape index: {}]   ;;  %s1152_s6 = inlined_call_operand.hbm [shape: f32[2,16,128], index: 6, kind: output, shape index: {}]  }
   0x1   :  { %12 = vsyncpa [#allocation7], 0 }
   0x2   :  { %13 = vsyncpa [#allocation10], 0 }
   0x3   :  { %14 = vsyncpa [#allocation13], 0 }
   0x4   :  { %15 = vsyncpa [#allocation5], 0  ;;  %s935_s21 = smov [#allocation6]   ;;  %s936_s23 = smov [#allocation9]  }
   0x5   :  { %s33_s22 = sshll.u32 %s935_s21, 4  ;;  %s56_s24 = sshll.u32 %s936_s23, 4  ;;  %s34_s22 = int_to_ptr.vmem [resolvable:$true] %s33_s22  ;;  %s983_s24 = int_to_ptr.vmem [resolvable:$true] %s56_s24 }
   0x6   :  { %s771_s27 = scalar_lea.hbm %s1147_s1, 3072 }
   0x7   :  { %p772_p0 = scmp.ne.s32.totalorder %s1147_s1, %s771_s27  ;;  %p775_p1 = scmp.lt.u32.totalorder %s771_s27, %s1147_s1 }
   0x9   :  { %p777_p2 = pnand %p775_p1, %p772_p0 }
   0xb   :  { %780 = shalt.err (!%p777_p2)
}
   0xc   :  { %s781_s8 = scalar_lea.vmem %s34_s22, 3072  ;;  %p786_p4 = scmp.lt.s32.totalorder %s34_s22, %s34_s22 }
   0xd   :  { %p782_p3 = scmp.ne.s32.totalorder %s34_s22, %s781_s8  ;;  %p787_p5 = scmp.lt.s32.totalorder %s781_s8, %s781_s8 }
   0xf   :  { %p788_p6 = por %p787_p5, %p786_p4 }
  0x11   :  { %p789_p7 = pnand %p788_p6, %p782_p3 }
  0x13   :  { %792 = shalt.err (!%p789_p7)
}
  0x14   :  { %s937_s9 = smov 128   ;;  %s938_s10 = smov 8  }
  0x15   :  { %39 = dma.hbm_to_vmem [thread:$0]  %s1147_s1, 3072, %s34_s22, [#allocation7], %s937_s9, %s937_s9, %s938_s10  }
  0x16   :  { %s793_s15 = scalar_lea.hbm %s1149_s3, 16 }
  0x17   :  { %p794_p8 = scmp.ne.s32.totalorder %s1149_s3, %s793_s15  ;;  %p797_p9 = scmp.lt.u32.totalorder %s793_s15, %s1149_s3 }
  0x19   :  { %p799_p10 = pnand %p797_p9, %p794_p8 }
  0x1b   :  { %802 = shalt.err (!%p799_p10)
}
  0x1c   :  { %s803_s20 = scalar_lea.vmem %s983_s24, 16  ;;  %s807_s1 = scalar_lea.vmem %s983_s24, 32 }
  0x1d   :  { %p804_p11 = scmp.ne.s32.totalorder %s983_s24, %s803_s20  ;;  %p808_p12 = scmp.lt.s32.totalorder %s983_s24, %s983_s24 }
  0x1e   :  { %p809_p13 = scmp.lt.s32.totalorder %s807_s1, %s803_s20 }
  0x20   :  { %p810_p0 = por %p809_p13, %p808_p12 }
  0x22   :  { %p811_p1 = pnand %p810_p0, %p804_p11 }
  0x24   :  { %814 = shalt.err (!%p811_p1)
}
  0x25   :  { %59 = dma.hbm_to_vmem [thread:$0]  %s1149_s3, 16, %s983_s24, [#allocation10]  }
  0x26   :  { %s939_s23 = smov [#allocation3]   ;;  %s940_s26 = smov [#allocation8]  }
  0x27   :  { %s21_s25 = sshll.u32 %s939_s23, 4  ;;  %s46_s27 = sshll.u32 %s940_s26, 4  ;;  %s22_s25 = int_to_ptr.vmem [resolvable:$true] %s21_s25  ;;  %s47_s27 = int_to_ptr.vmem [resolvable:$true] %s46_s27 }
  0x28   :  { %s815_s30 = scalar_lea.hbm %s1146_s0, 512 }
  0x29   :  { %p816_p2 = scmp.ne.s32.totalorder %s1146_s0, %s815_s30  ;;  %p819_p3 = scmp.lt.u32.totalorder %s815_s30, %s1146_s0 }
  0x2b   :  { %p821_p4 = pnand %p819_p3, %p816_p2 }
  0x2d   :  { %824 = shalt.err (!%p821_p4)
}
  0x2e   :  { %s825_s3 = scalar_lea.vmem %s22_s25, 512  ;;  %p830_p6 = scmp.lt.s32.totalorder %s22_s25, %s22_s25 }
  0x2f   :  { %p826_p5 = scmp.ne.s32.totalorder %s22_s25, %s825_s3  ;;  %p831_p7 = scmp.lt.s32.totalorder %s825_s3, %s825_s3 }
  0x31   :  { %p832_p8 = por %p831_p7, %p830_p6 }
  0x33   :  { %p833_p9 = pnand %p832_p8, %p826_p5 }
  0x35   :  { %836 = shalt.err (!%p833_p9)
}
  0x36   :  { %27 = dma.hbm_to_vmem [thread:$0]  %s1146_s0, 512, %s22_s25, [#allocation4], %s937_s9, %s937_s9, %s938_s10  }
  0x37   :  { %s837_s16 = scalar_lea.hbm %s1148_s2, 16 }
  0x38   :  { %p838_p10 = scmp.ne.s32.totalorder %s1148_s2, %s837_s16  ;;  %p841_p11 = scmp.lt.u32.totalorder %s837_s16, %s1148_s2 }
  0x3a   :  { %p843_p12 = pnand %p841_p11, %p838_p10 }
  0x3c   :  { %846 = shalt.err (!%p843_p12)
}
  0x3d   :  { %s847_s1 = scalar_lea.vmem %s47_s27, 16  ;;  %s851_s21 = scalar_lea.vmem %s47_s27, 32 }
  0x3e   :  { %p848_p13 = scmp.ne.s32.totalorder %s47_s27, %s847_s1  ;;  %p852_p0 = scmp.lt.s32.totalorder %s47_s27, %s47_s27 }
  0x3f   :  { %p853_p1 = scmp.lt.s32.totalorder %s851_s21, %s847_s1 }
  0x41   :  { %p854_p2 = por %p853_p1, %p852_p0 }
  0x43   :  { %p855_p3 = pnand %p854_p2, %p848_p13 }
  0x45   :  { %858 = shalt.err (!%p855_p3)
}
  0x46   :  { %49 = dma.hbm_to_vmem [thread:$0]  %s1148_s2, 16, %s47_s27, [#allocation7]  }
  0x47   :  { %s941_s23 = smov [#allocation11]   ;;  %s942_s26 = smov [#allocation12]  }
  0x48   :  { %s66_s25 = sshll.u32 %s941_s23, 4  ;;  %s75_s28 = sshll.u32 %s942_s26, 4  ;;  %s67_s25 = int_to_ptr.vmem [resolvable:$true] %s66_s25  ;;  %s1045_s28 = int_to_ptr.vmem [resolvable:$true] %s75_s28 }
  0x49   :  { %s859_s7 = scalar_lea.hbm %s1150_s4, 16 }
  0x4a   :  { %p860_p4 = scmp.ne.s32.totalorder %s1150_s4, %s859_s7  ;;  %p863_p5 = scmp.lt.u32.totalorder %s859_s7, %s1150_s4 }
  0x4c   :  { %p865_p6 = pnand %p863_p5, %p860_p4 }
  0x4e   :  { %868 = shalt.err (!%p865_p6)
}
  0x4f   :  { %s869_s2 = scalar_lea.vmem %s67_s25, 16  ;;  %s873_s27 = scalar_lea.vmem %s67_s25, 32 }
  0x50   :  { %p870_p7 = scmp.ne.s32.totalorder %s67_s25, %s869_s2  ;;  %p874_p8 = scmp.lt.s32.totalorder %s67_s25, %s67_s25 }
  0x51   :  { %p875_p9 = scmp.lt.s32.totalorder %s873_s27, %s869_s2 }
  0x53   :  { %p876_p10 = por %p875_p9, %p874_p8 }
  0x55   :  { %p877_p11 = pnand %p876_p10, %p870_p7 }
  0x57   :  { %880 = shalt.err (!%p877_p11)
}
  0x58   :  { %69 = dma.hbm_to_vmem [thread:$0]  %s1150_s4, 16, %s67_s25, [#allocation10]  }
  0x59   :  { %s881_s16 = scalar_lea.hbm %s1151_s5, 2048 }
  0x5a   :  { %p882_p12 = scmp.ne.s32.totalorder %s1151_s5, %s881_s16  ;;  %p885_p13 = scmp.lt.u32.totalorder %s881_s16, %s1151_s5 }
  0x5c   :  { %p887_p0 = pnand %p885_p13, %p882_p12 }
  0x5e   :  { %890 = shalt.err (!%p887_p0)
}
  0x5f   :  { %s891_s1 = scalar_lea.vmem %s1045_s28, 2048  ;;  %p896_p2 = scmp.lt.s32.totalorder %s1045_s28, %s1045_s28 }
  0x60   :  { %p892_p1 = scmp.ne.s32.totalorder %s1045_s28, %s891_s1  ;;  %p897_p3 = scmp.lt.s32.totalorder %s891_s1, %s891_s1 }
  0x62   :  { %p898_p4 = por %p897_p3, %p896_p2 }
  0x64   :  { %p899_p5 = pnand %p898_p4, %p892_p1 }
  0x66   :  { %902 = shalt.err (!%p899_p5)
}
  0x67   :  { %81 = dma.hbm_to_vmem [thread:$0]  %s1151_s5, 2048, %s1045_s28, [#allocation13], %s937_s9, %s937_s9, %s938_s10  }
  0x68   :  { %925 = dma.done.wait [#allocation4], 512  }
  0x69   :  { %926 = vsyncadd [#allocation4], 4294966784 }
  0x6a   :  { %927 = dma.done.wait [#allocation7], 3088  }
  0x6b   :  { %928 = vsyncadd [#allocation7], 4294964208 }
  0x6c   :  { %929 = dma.done.wait [#allocation10], 32  }
  0x6d   :  { %930 = vsyncadd [#allocation10], 4294967264 }
  0x6e   :  { %931 = dma.done.wait [#allocation13], 2048  }
  0x6f   :  { %932 = vsyncadd [#allocation13], 4294965248  ;;  %vm100_vm0 = vcmask 516096   ;;  %v943_v0 = vmov 0.0|0.0   ;;  %v944_v1 = vmov 0.0   ;;  %v128_v2 = vld [vmem:[#allocation3] sm:$0xff] }
  0x70   :  { %664 = vmatprep.subr.bf16.mxu0 %v943_v0  ;;  %162 = vst.msk [vmem:[#allocation2 + $0x1f] sm:$0x1] %vm100_vm0, %v944_v1  ;;  %163 = vst.msk [vmem:[#allocation2 + $0x3f] sm:$0x1] %vm100_vm0, %v944_v1  ;;  %700 = vmatprep.subr.bf16.mxu1 %v943_v0  ;;  %v130_v3 = vld [vmem:[#allocation3 + $0x10] sm:$0xff]  ;;  %vm122_vm1 = vcmask 523265  }
  0x71   :  { %101 = vst.msk [vmem:[#allocation2] sm:$0x1] %vm100_vm0, %v944_v1  ;;  %102 = vst.msk [vmem:[#allocation2 + $0x20] sm:$0x1] %vm100_vm0, %v944_v1  ;;  %s945_s5 = smov 64   ;;  %v129_v4 = vld [vmem:[#allocation3 + $0x8] sm:$0xff] }
  0x72   :  { %136 = vrot.lane.b32.xlu0 %v128_v2, %s945_s5  ;;  %140 = vrot.lane.b32.xlu1 %v130_v3, %s945_s5  ;;  %v172_v5 = vld [vmem:[#allocation6] sm:$0xff]  ;;  %v173_v6 = vld [vmem:[#allocation6 + $0x8] sm:$0xff]  ;;  %v112_v7 = vrot.slane %v128_v2, 7  ;;  %v115_v8 = vrot.slane %v130_v3, 7  ;;  %v131_v9 = vld [vmem:[#allocation3 + $0x18] sm:$0xff]  ;;  %vm124_vm2 = vcmask 523264  }
  0x73   :  { %v665_v10 = vpack.c.bf16 %v173_v6, %v172_v5  ;;  %v174_v11 = vld [vmem:[#allocation6 + $0x10] sm:$0xff]  ;;  %v175_v12 = vld [vmem:[#allocation6 + $0x18] sm:$0xff]  ;;  %v176_v14 = vld [vmem:[#allocation6 + $0x20] sm:$0xff]  ;;  %vm111_vm3 = vcmask 1040384   ;;  %vm158_vm4 = vcmask 522240   ;;  %vm148_vm5 = vcmask 1048064  }
  0x74   :  { %123 = vst.msk [vmem:[#allocation2] sm:$0xfe] %vm122_vm1, %v112_v7  ;;  %126 = vst.msk [vmem:[#allocation2 + $0x20] sm:$0xfe] %vm122_vm1, %v115_v8  ;;  %v668_v13 = vpack.c.bf16 %v175_v12, %v174_v11  ;;  %v177_v15 = vld [vmem:[#allocation6 + $0x28] sm:$0xff]  ;;  %v178_v18 = vld [vmem:[#allocation6 + $0x30] sm:$0xff] }
  0x75   :  { %666 = vmatpush1.bf16.msra.mxu0 %v665_v10  ;;  %v671_v16 = vpack.c.bf16 %v177_v15, %v176_v14  ;;  %v104_v17 = vld [vmem:[#allocation3 + $0x8] sm:$0x7f]  ;;  %v179_v19 = vld [vmem:[#allocation6 + $0x38] sm:$0xff]  ;;  %v180_v32 = vld [vmem:[#allocation6 + $0x40] sm:$0xff]  ;;  %vm946_vm6 = vmmov 0   ;;  %s947_s0 = smov [#allocation14]  }
  0x76   :  { %138 = vrot.lane.b32.xlu0 %v129_v4, %s945_s5  ;;  %142 = vrot.lane.b32.xlu1 %v131_v9, %s945_s5  ;;  %v113_v20 = vrot.slane %v104_v17, 7  ;;  %v153_v21 = vld [vmem:[#allocation3 + $0x1] sm:$0xff]  ;;  %v106_v22 = vld [vmem:[#allocation3 + $0x18] sm:$0x7f]  ;;  %v154_v23 = vld [vmem:[#allocation3 + $0x9] sm:$0x7f]  ;;  %v674_v30 = vpack.c.bf16 %v179_v19, %v178_v18 }
  0x77   :  { %667 = vmatprep.subr.bf16.mxu0 %v943_v0  ;;  %157 = vst.msk [vmem:[#allocation2 + $0x8] sm:$0xff] %vm124_vm2, %v153_v21  ;;  %v155_v24 = vld [vmem:[#allocation3 + $0x11] sm:$0xff]  ;;  %v116_v26 = vrot.slane %v106_v22, 7  ;;  %v156_v27 = vld [vmem:[#allocation3 + $0x19] sm:$0x7f]  ;;  %v300_v28 = vld [vmem:[#allocation12] sm:$0xff]  ;;  %626 = vmatprep.mubr.msk.f32.mxu1 %vm946_vm6, %v944_v1 }
  0x78   :  { %v114_v25 = vsel %vm111_vm3, %v112_v7, %v113_v20  ;;  %159 = vst.msk [vmem:[#allocation2 + $0x18] sm:$0x7f] %vm158_vm4, %v154_v23  ;;  %v301_v29 = vld [vmem:[#allocation12 + $0x8] sm:$0xff]  ;;  %161 = vst.msk [vmem:[#allocation2 + $0x38] sm:$0x7f] %vm158_vm4, %v156_v27  ;;  %v183_v37 = vld [vmem:[#allocation6 + $0x58] sm:$0xff] }
  0x79   :  { %669 = vmatpush1.bf16.msra.mxu0 %v668_v13  ;;  %160 = vst.msk [vmem:[#allocation2 + $0x28] sm:$0xff] %vm124_vm2, %v155_v24  ;;  %125 = vst.msk [vmem:[#allocation2 + $0x10] sm:$0xff] %vm124_vm2, %v114_v25  ;;  %v1093_v31 = vpack.c.bf16 %v301_v29, %v300_v28  ;;  %v181_v33 = vld [vmem:[#allocation6 + $0x48] sm:$0xff]  ;;  %v117_v34 = vsel %vm111_vm3, %v115_v8, %v116_v26  ;;  %v182_v36 = vld [vmem:[#allocation6 + $0x50] sm:$0xff]  ;;  %s539_s22 = sshll.u32 %s947_s0, 4  ;;  %s540_s22 = int_to_ptr.vmem [resolvable:$true] %s539_s22 }
  0x7a   :  { %670 = vmatprep.subr.bf16.mxu0 %v943_v0  ;;  %127 = vst.msk [vmem:[#allocation2 + $0x30] sm:$0xff] %vm124_vm2, %v117_v34  ;;  %v677_v35 = vpack.c.bf16 %v181_v33, %v180_v32  ;;  %v680_v39 = vpack.c.bf16 %v183_v37, %v182_v36  ;;  %v184_v40 = vld [vmem:[#allocation6 + $0x60] sm:$0xff]  ;;  %v185_v41 = vld [vmem:[#allocation6 + $0x68] sm:$0xff]  ;;  %v186_v43 = vld [vmem:[#allocation6 + $0x70] sm:$0xff]  ;;  %s903_s23 = scalar_lea.vmem %s540_s22, 512  ;;  %p908_p7 = scmp.lt.s32.totalorder %s540_s22, %s540_s22 }
  0x7b   :  { %702 = vmatpush3.bf16.msra.mxu1 %v1093_v31  ;;  %v683_v42 = vpack.c.bf16 %v185_v41, %v184_v40  ;;  %v187_v44 = vld [vmem:[#allocation6 + $0x78] sm:$0xff]  ;;  %v188_v46 = vld [vmem:[#allocation6 + $0x80] sm:$0xff]  ;;  %v189_v47 = vld [vmem:[#allocation6 + $0x88] sm:$0xff]  ;;  %p904_p6 = scmp.ne.s32.totalorder %s540_s22, %s903_s23  ;;  %p909_p8 = scmp.lt.s32.totalorder %s903_s23, %s903_s23 }
  0x7c   :  { %703 = vmatprep.subr.bf16.mxu1 %v943_v0  ;;  %v686_v45 = vpack.c.bf16 %v187_v44, %v186_v43  ;;  %v689_v48 = vpack.c.bf16 %v189_v47, %v188_v46  ;;  %v190_v49 = vld [vmem:[#allocation6 + $0x90] sm:$0xff]  ;;  %v191_v50 = vld [vmem:[#allocation6 + $0x98] sm:$0xff]  ;;  %v192_v52 = vld [vmem:[#allocation6 + $0xa0] sm:$0xff] }
  0x7d   :  { %672 = vmatpush1.bf16.msra.mxu0 %v671_v16  ;;  %v692_v51 = vpack.c.bf16 %v191_v50, %v190_v49  ;;  %v193_v53 = vld [vmem:[#allocation6 + $0xa8] sm:$0xff]  ;;  %v194_v55 = vld [vmem:[#allocation6 + $0xb0] sm:$0xff]  ;;  %v195_v56 = vld [vmem:[#allocation6 + $0xb8] sm:$0xff]  ;;  %p910_p9 = por %p909_p8, %p908_p7 }
  0x7e   :  { %673 = vmatprep.subr.bf16.mxu0 %v943_v0  ;;  %v165_v38 = vld [vmem:[#allocation2 + $0x8] sm:$0xff]  ;;  %v695_v54 = vpack.c.bf16 %v193_v53, %v192_v52  ;;  %v698_v57 = vpack.c.bf16 %v195_v56, %v194_v55  ;;  %v302_v7 = vld [vmem:[#allocation12 + $0x10] sm:$0xff]  ;;  %v303_v8 = vld [vmem:[#allocation12 + $0x18] sm:$0xff] }
  0x7f   :  { %555 = vmatprep.mubr.msk.f32.mxu0 %vm124_vm2, %v165_v38  ;;  %v167_v62 = vld [vmem:[#allocation2 + $0x18] sm:$0xff]  ;;  %v704_v9 = vpack.c.bf16 %v303_v8, %v302_v7  ;;  %v304_v10 = vld [vmem:[#allocation12 + $0x20] sm:$0xff]  ;;  %v305_v11 = vld [vmem:[#allocation12 + $0x28] sm:$0xff]  ;;  %p911_p10 = pnand %p910_p9, %p904_p6 }
  0x80   :  { %v169_v2 = vld [vmem:[#allocation2 + $0x28] sm:$0xff]  ;;  %v171_v5 = vld [vmem:[#allocation2 + $0x38] sm:$0xff]  ;;  %v707_v12 = vpack.c.bf16 %v305_v11, %v304_v10  ;;  %v554_v33 = vld [vmem:[#allocation8] ss:$0 sm:$0xff] }
  0x81   :  { %675 = vmatpush1.bf16.msra.mxu0 %v674_v30  ;;  %705 = vmatpush3.bf16.msra.mxu1 %v704_v9  ;;  %v306_v13 = vld [vmem:[#allocation12 + $0x30] sm:$0xff]  ;;  %v307_v14 = vld [vmem:[#allocation12 + $0x38] sm:$0xff]  ;;  %v308_v16 = vld [vmem:[#allocation12 + $0x40] sm:$0xff] }
  0x82   :  { %676 = vmatprep.subr.bf16.mxu0 %v943_v0  ;;  %706 = vmatprep.subr.bf16.mxu1 %v943_v0  ;;  %v710_v15 = vpack.c.bf16 %v307_v14, %v306_v13  ;;  %v309_v17 = vld [vmem:[#allocation12 + $0x48] sm:$0xff]  ;;  %v310_v19 = vld [vmem:[#allocation12 + $0x50] sm:$0xff]  ;;  %v311_v20 = vld [vmem:[#allocation12 + $0x58] sm:$0xff] }
  0x83   :  { %v713_v18 = vpack.c.bf16 %v309_v17, %v308_v16  ;;  %v716_v21 = vpack.c.bf16 %v311_v20, %v310_v19  ;;  %v312_v22 = vld [vmem:[#allocation12 + $0x60] sm:$0xff]  ;;  %v313_v23 = vld [vmem:[#allocation12 + $0x68] sm:$0xff]  ;;  %v314_v25 = vld [vmem:[#allocation12 + $0x70] sm:$0xff] }
  0x84   :  { %v719_v24 = vpack.c.bf16 %v313_v23, %v312_v22  ;;  %v315_v26 = vld [vmem:[#allocation12 + $0x78] sm:$0xff] }
  0x85   :  { %678 = vmatpush1.bf16.msra.mxu0 %v677_v35  ;;  %708 = vmatpush3.bf16.msra.mxu1 %v707_v12  ;;  %v722_v27 = vpack.c.bf16 %v315_v26, %v314_v25  ;;  %v559_v16 = vld [vmem:[#allocation11] ss:$0 sm:$0xff] }
  0x86   :  { %679 = vmatprep.subr.bf16.mxu0 %v943_v0  ;;  %709 = vmatprep.subr.bf16.mxu1 %v943_v0 }
  0x89   :  { %681 = vmatpush1.bf16.msra.mxu0 %v680_v39  ;;  %711 = vmatpush3.bf16.msra.mxu1 %v710_v15 }
  0x8a   :  { %682 = vmatprep.subr.bf16.mxu0 %v943_v0  ;;  %712 = vmatprep.subr.bf16.mxu1 %v943_v0 }
  0x8d   :  { %684 = vmatpush1.bf16.msra.mxu0 %v683_v42  ;;  %714 = vmatpush3.bf16.msra.mxu1 %v713_v18 }
  0x8e   :  { %685 = vmatprep.subr.bf16.mxu0 %v943_v0  ;;  %715 = vmatprep.subr.bf16.mxu1 %v943_v0 }
  0x91   :  { %687 = vmatpush1.bf16.msra.mxu0 %v686_v45  ;;  %717 = vmatpush3.bf16.msra.mxu1 %v716_v21 }
  0x92   :  { %688 = vmatprep.subr.bf16.mxu0 %v943_v0  ;;  %718 = vmatprep.subr.bf16.mxu1 %v943_v0 }
  0x95   :  { %690 = vmatpush1.bf16.msra.mxu0 %v689_v48  ;;  %720 = vmatpush3.bf16.msra.mxu1 %v719_v24 }
  0x96   :  { %691 = vmatprep.subr.bf16.mxu0 %v943_v0  ;;  %721 = vmatprep.subr.bf16.mxu1 %v943_v0 }
  0x99   :  { %693 = vmatpush1.bf16.msra.mxu0 %v692_v51  ;;  %723 = vmatpush3.bf16.msra.mxu1 %v722_v27 }
  0x9a   :  { %694 = vmatprep.subr.bf16.mxu0 %v943_v0  ;;  %724 = vmatprep.subr.bf16.mxu1 %v943_v0 }
  0x9d   :  { %696 = vmatpush1.bf16.msra.mxu0 %v695_v54 }
  0x9e   :  { %697 = vmatprep.subr.bf16.mxu0 %v943_v0 }
  0xa1   :  { %699 = vmatpush1.bf16.msra.mxu0 %v698_v57 }
  0xe4   :  { %v137_v58 = vpop.permute.xlu0 %136  ;;  %v141_v59 = vpop.permute.xlu1 %140 }
  0xe5   :  { %149 = vst.msk [vmem:[#allocation2] sm:$0xff] %vm148_vm5, %v137_v58  ;;  %151 = vst.msk [vmem:[#allocation2 + $0x20] sm:$0xff] %vm148_vm5, %v141_v59 }
  0xe8   :  { %v139_v60 = vpop.permute.xlu0 %138  ;;  %v143_v61 = vpop.permute.xlu1 %142 }
  0xe9   :  { %150 = vst.msk [vmem:[#allocation2 + $0x10] sm:$0xff] %vm148_vm5, %v139_v60  ;;  %152 = vst.msk [vmem:[#allocation2 + $0x30] sm:$0xff] %vm148_vm5, %v143_v61 }
  0xec   :  { %v164_v63 = vld [vmem:[#allocation2] sm:$0xff] }
  0xed   :  { %280 = vmatmul.mubr.f32.vlgmr.msra.gmra.mrb[0].mxu0 %v164_v63  ;;  %v168_v4 = vld [vmem:[#allocation2 + $0x20] sm:$0xff] }
  0xee   :  { %556 = vmatprep.mubr.msk.f32.mxu0 %vm124_vm2, %v167_v62 }
  0xf0   :  { %v166_v3 = vld [vmem:[#allocation2 + $0x10] sm:$0xff] }
  0xf1   :  { %285 = vmatmul.mubr.f32.gmra.mrb[2].mxu0 %v166_v3  ;;  %v170_v6 = vld [vmem:[#allocation2 + $0x30] sm:$0xff] }
  0xf2   :  { %557 = vmatprep.mubr.msk.f32.mxu0 %vm124_vm2, %v169_v2 }
  0xf5   :  { %290 = vmatmul.mubr.f32.gmra.mrb[4].mxu0 %v168_v4 }
  0xf6   :  { %558 = vmatprep.mubr.msk.f32.mxu0 %vm124_vm2, %v171_v5 }
  0xf9   :  { %295 = vmatmul.mubr.f32.gmra.mrb[6].mxu0 %v170_v6 }
 0x1c0   :  { %v281_v28 = vpop.f32.mrb[0].mxu0 }
 0x1c1   :  { %v283_v29 = vpop.f32.mrb[1].mxu0  ;;  %v282_v36 = vadd.f32 %v554_v33, %v281_v28 }
 0x1c4   :  { %v286_v30 = vpop.f32.mrb[2].mxu0 }
 0x1c5   :  { %v288_v32 = vpop.f32.mrb[3].mxu0  ;;  %v287_v34 = vadd.f32 %v554_v33, %v286_v30 }
 0x1c7   :  { %v316_v39 = vadd.f32 %v287_v34, %v282_v36 }
 0x1c8   :  { %v291_v35 = vpop.f32.mrb[4].mxu0 }
 0x1c9   :  { %v292_v37 = vadd.f32 %v554_v33, %v291_v35  ;;  %v293_v38 = vpop.f32.mrb[5].mxu0 }
 0x1cb   :  { %v317_v41 = vadd.f32 %v316_v39, %v292_v37 }
 0x1cc   :  { %v296_v40 = vpop.f32.mrb[6].mxu0 }
 0x1cd   :  { %v297_v42 = vadd.f32 %v554_v33, %v296_v40  ;;  %v298_v43 = vpop.f32.mrb[7].mxu0 }
 0x1cf   :  { %v318_v44 = vadd.f32 %v317_v41, %v297_v42 }
 0x1d1   :  { %v319_v45 = vrot.slane %v318_v44, 4 }
 0x1d3   :  { %v320_v46 = vadd.f32 %v319_v45, %v318_v44 }
 0x1d5   :  { %v321_v47 = vrot.slane %v320_v46, 2 }
 0x1d7   :  { %v322_v48 = vadd.f32 %v321_v47, %v320_v46 }
 0x1d9   :  { %v323_v49 = vrot.slane %v322_v48, 1 }
 0x1db   :  { %v324_v50 = vadd.f32 %v323_v49, %v322_v48 }
 0x1dd   :  { %627 = vmatmul.mubr.f32.vlgmr.msra.gmra.mrb[0].mxu1 %v324_v50 }
 0x1de   :  { %726 = vmatpush3.bf16.msra.mxu1 %v1093_v31  ;;  %661 = vmatprep.mubr.msk.f32.mxu1 %vm946_vm6, %v944_v1  ;;  %v395_v1 = vlaneseq }
 0x1df   :  { %727 = vmatprep.subr.bf16.mxu1 %v943_v0 }
 0x1e0   :  { %v396_v31 = vshrl.u32 %v395_v1, 7 }
 0x1e2   :  { %729 = vmatpush3.bf16.msra.mxu1 %v704_v9  ;;  %v397_v51 = vsub.s32 0, %v396_v31 }
 0x1e3   :  { %730 = vmatprep.subr.bf16.mxu1 %v943_v0 }
 0x1e6   :  { %732 = vmatpush3.bf16.msra.mxu1 %v707_v12  ;;  %v487_v12 = vld [vmem:[#allocation9] sm:$0x1] }
 0x1e7   :  { %733 = vmatprep.subr.bf16.mxu1 %v943_v0 }
 0x1ea   :  { %735 = vmatpush3.bf16.msra.mxu1 %v710_v15 }
 0x1eb   :  { %736 = vmatprep.subr.bf16.mxu1 %v943_v0 }
 0x1ee   :  { %738 = vmatpush3.bf16.msra.mxu1 %v713_v18 }
 0x1ef   :  { %739 = vmatprep.subr.bf16.mxu1 %v943_v0 }
 0x1f2   :  { %741 = vmatpush3.bf16.msra.mxu1 %v716_v21 }
 0x1f3   :  { %742 = vmatprep.subr.bf16.mxu1 %v943_v0 }
 0x1f6   :  { %744 = vmatpush3.bf16.msra.mxu1 %v719_v24 }
 0x1f7   :  { %745 = vmatprep.subr.bf16.mxu1 %v943_v0 }
 0x1fa   :  { %747 = vmatpush3.bf16.msra.mxu1 %v722_v27 }
 0x2b0   :  { %v391_v52 = vpop.f32.mrb[0].mxu1 }
 0x2b1   :  { %v398_v53 = vrot.slane %v391_v52, %v397_v51  ;;  %v628_v54 = vpop.f32.mrb[1].mxu1 }
 0x2b3   :  { %v399_v55 = vsub.f32 %v282_v36, %v398_v53  ;;  %v400_v56 = vsub.f32 %v287_v34, %v398_v53  ;;  %v401_v57 = vsub.f32 %v292_v37, %v398_v53  ;;  %v402_v58 = vsub.f32 %v297_v42, %v398_v53 }
 0x2b5   :  { %v403_v59 = vmul.f32 %v399_v55, %v399_v55  ;;  %v404_v60 = vmul.f32 %v400_v56, %v400_v56  ;;  %v405_v61 = vmul.f32 %v401_v57, %v401_v57  ;;  %v406_v63 = vmul.f32 %v402_v58, %v402_v58 }
 0x2b7   :  { %v407_v62 = vadd.f32 %v404_v60, %v403_v59 }
 0x2b9   :  { %v408_v2 = vadd.f32 %v407_v62, %v405_v61 }
 0x2bb   :  { %v409_v3 = vadd.f32 %v408_v2, %v406_v63 }
 0x2bd   :  { %v410_v4 = vrot.slane %v409_v3, 4 }
 0x2bf   :  { %v411_v0 = vadd.f32 %v410_v4, %v409_v3 }
 0x2c1   :  { %v412_v5 = vrot.slane %v411_v0, 2 }
 0x2c3   :  { %v413_v6 = vadd.f32 %v412_v5, %v411_v0 }
 0x2c5   :  { %v414_v7 = vrot.slane %v413_v6, 1 }
 0x2c7   :  { %v415_v8 = vadd.f32 %v414_v7, %v413_v6 }
 0x2c9   :  { %662 = vmatmul.mubr.f32.vlgmr.msra.gmra.mrb[2].mxu1 %v415_v8 }
 0x39c   :  { %v482_v9 = vpop.f32.mrb[2].mxu1 }
 0x39d   :  { %v483_v10 = vadd.f32 1e-05, %v482_v9  ;;  %v663_v11 = vpop.f32.mrb[3].mxu1 }
 0x39f   :  { %761 = vrsqrt.f32 %v483_v10 }
 0x3a9   :  { %v762_v13 = vpop.eup %761 }
 0x3aa   :  { %v488_v14 = vmul.f32 %v762_v13, %v487_v12 }
 0x3ac   :  { %v493_v15 = vrot.slane %v488_v14, %v397_v51 }
 0x3ae   :  { %v495_v17 = vmul.f32 %v493_v15, %v399_v55  ;;  %v496_v18 = vmul.f32 %v493_v15, %v400_v56  ;;  %v497_v19 = vmul.f32 %v493_v15, %v401_v57  ;;  %v498_v20 = vmul.f32 %v493_v15, %v402_v58 }
 0x3b0   :  { %v506_v21 = vadd.f32 %v559_v16, %v495_v17  ;;  %v507_v22 = vadd.f32 %v559_v16, %v496_v18  ;;  %v508_v23 = vadd.f32 %v559_v16, %v497_v19  ;;  %v509_v24 = vadd.f32 %v559_v16, %v498_v20 }
 0x3b2   :  { %v514_v25 = vmul.f32 0.70710677, %v506_v21  ;;  %v515_v26 = vmul.f32 0.70710677, %v507_v22  ;;  %v516_v27 = vmul.f32 0.70710677, %v508_v23 }
 0x3b3   :  { %v517_v28 = vmul.f32 0.70710677, %v509_v24  ;;  %v510_v32 = vmul.f32 0.5, %v506_v21  ;;  %v511_v35 = vmul.f32 0.5, %v507_v22  ;;  %v512_v38 = vmul.f32 0.5, %v508_v23 }
 0x3b4   :  { %763 = verf.f32 %v514_v25  ;;  %v513_v41 = vmul.f32 0.5, %v509_v24 }
 0x3b5   :  { %765 = verf.f32 %v515_v26 }
 0x3b6   :  { %767 = verf.f32 %v516_v27 }
 0x3b7   :  { %769 = verf.f32 %v517_v28 }
 0x3be   :  { %v764_v29 = vpop.eup %763 }
 0x3bf   :  { %v766_v30 = vpop.eup %765  ;;  %v522_v33 = vadd.f32 1.0, %v764_v29 }
 0x3c0   :  { %v768_v34 = vpop.eup %767  ;;  %v523_v36 = vadd.f32 1.0, %v766_v30 }
 0x3c1   :  { %v770_v37 = vpop.eup %769  ;;  %v524_v39 = vadd.f32 1.0, %v768_v34  ;;  %v526_v40 = vmul.f32 %v522_v33, %v510_v32 }
 0x3c2   :  { %v525_v42 = vadd.f32 1.0, %v770_v37  ;;  %v527_v43 = vmul.f32 %v523_v36, %v511_v35 }
 0x3c3   :  { %v528_v44 = vmul.f32 %v524_v39, %v512_v38  ;;  %530 = vst [vmem:[#allocation14] sm:$0xff] %v526_v40 }
 0x3c4   :  { %v529_v45 = vmul.f32 %v525_v42, %v513_v41  ;;  %531 = vst [vmem:[#allocation14 + $0x8] sm:$0xff] %v527_v43 }
 0x3c5   :  { %532 = vst [vmem:[#allocation14 + $0x10] sm:$0xff] %v528_v44 }
 0x3c6   :  { %533 = vst [vmem:[#allocation14 + $0x18] sm:$0xff] %v529_v45 }
 0x3c7   :  { %914 = shalt.err (!%p911_p10)
}
 0x3c8   :  { %s915_s28 = scalar_lea.hbm %s1152_s6, 512 }
 0x3c9   :  { %p916_p11 = scmp.ne.s32.totalorder %s1152_s6, %s915_s28  ;;  %p919_p12 = scmp.lt.u32.totalorder %s915_s28, %s1152_s6 }
 0x3cb   :  { %p921_p13 = pnand %p919_p12, %p916_p11 }
 0x3cd   :  { %924 = shalt.err (!%p921_p13)
}
 0x3ce   :  { %545 = dma.vmem_to_hbm [thread:$0]  %s540_s22, 512, %s1152_s6, [#allocation5], %s937_s9, %s937_s9, %s938_s10  }
 0x3cf   :  { %933 = dma.done.wait [#allocation5], 512  }
 0x3d0   :  { %934 = vsyncadd [#allocation5], 4294966784 }
 0x3d1   :  { %549 = vsyncpa [#allocation4], 1 }
 0x3d2   :  { %550 = vsyncpa [#allocation7], 1 }
 0x3d3   :  { %551 = vsyncpa [#allocation10], 1 }
 0x3d4   :  { %552 = vsyncpa [#allocation13], 1 }
 0x3d5   :  { %553 = vsyncpa [#allocation5], 1 }

// kernel: conv_block_forward.3
= control target key start
LH: loop header
LB: loop body
LE: loop exit
PB: predicated region body
PF: predicated region fallthrough
CT: control target
= control target key end

     0   :  { %11 = vsyncpa [#allocation4], 0  ;;  %s1306_s0 = inlined_call_operand.hbm [shape: f32[2,16,128], index: 0, kind: input, shape index: {}]   ;;  %s1307_s1 = inlined_call_operand.hbm [shape: f32[384,128], index: 1, kind: input, shape index: {}]   ;;  %s1308_s2 = inlined_call_operand.hbm [shape: f32[1,128], index: 2, kind: input, shape index: {}]   ;;  %s1309_s3 = inlined_call_operand.hbm [shape: f32[1,128], index: 3, kind: input, shape index: {}]   ;;  %s1310_s4 = inlined_call_operand.hbm [shape: f32[1,128], index: 4, kind: input, shape index: {}]   ;;  %s1311_s5 = inlined_call_operand.hbm [shape: f32[128,128], index: 5, kind: input, shape index: {}]   ;;  %s1312_s6 = inlined_call_operand.hbm [shape: f32[2,16,128], index: 6, kind: output, shape index: {}]  }
   0x1   :  { %12 = vsyncpa [#allocation7], 0 }
   0x2   :  { %13 = vsyncpa [#allocation10], 0 }
   0x3   :  { %14 = vsyncpa [#allocation13], 0 }
   0x4   :  { %15 = vsyncpa [#allocation5], 0  ;;  %s1140_s21 = smov [#allocation6]   ;;  %s1141_s23 = smov [#allocation9]  }
   0x5   :  { %s33_s22 = sshll.u32 %s1140_s21, 4  ;;  %s56_s24 = sshll.u32 %s1141_s23, 4  ;;  %s34_s22 = int_to_ptr.vmem [resolvable:$true] %s33_s22  ;;  %s1187_s24 = int_to_ptr.vmem [resolvable:$true] %s56_s24 }
   0x6   :  { %s976_s27 = scalar_lea.hbm %s1307_s1, 6144 }
   0x7   :  { %p977_p0 = scmp.ne.s32.totalorder %s1307_s1, %s976_s27  ;;  %p980_p1 = scmp.lt.u32.totalorder %s976_s27, %s1307_s1 }
   0x9   :  { %p982_p2 = pnand %p980_p1, %p977_p0 }
   0xb   :  { %985 = shalt.err (!%p982_p2)
}
   0xc   :  { %s986_s8 = scalar_lea.vmem %s34_s22, 6144  ;;  %p991_p4 = scmp.lt.s32.totalorder %s34_s22, %s34_s22 }
   0xd   :  { %p987_p3 = scmp.ne.s32.totalorder %s34_s22, %s986_s8  ;;  %p992_p5 = scmp.lt.s32.totalorder %s986_s8, %s986_s8 }
   0xf   :  { %p993_p6 = por %p992_p5, %p991_p4 }
  0x11   :  { %p994_p7 = pnand %p993_p6, %p987_p3 }
  0x13   :  { %997 = shalt.err (!%p994_p7)
}
  0x14   :  { %s1142_s9 = smov 128   ;;  %s1143_s10 = smov 8  }
  0x15   :  { %39 = dma.hbm_to_vmem [thread:$0]  %s1307_s1, 6144, %s34_s22, [#allocation7], %s1142_s9, %s1142_s9, %s1143_s10  }
  0x16   :  { %s998_s15 = scalar_lea.hbm %s1309_s3, 16 }
  0x17   :  { %p999_p8 = scmp.ne.s32.totalorder %s1309_s3, %s998_s15  ;;  %p1002_p9 = scmp.lt.u32.totalorder %s998_s15, %s1309_s3 }
  0x19   :  { %p1004_p10 = pnand %p1002_p9, %p999_p8 }
  0x1b   :  { %1007 = shalt.err (!%p1004_p10)
}
  0x1c   :  { %s1008_s20 = scalar_lea.vmem %s1187_s24, 16  ;;  %s1012_s1 = scalar_lea.vmem %s1187_s24, 32 }
  0x1d   :  { %p1009_p11 = scmp.ne.s32.totalorder %s1187_s24, %s1008_s20  ;;  %p1013_p12 = scmp.lt.s32.totalorder %s1187_s24, %s1187_s24 }
  0x1e   :  { %p1014_p13 = scmp.lt.s32.totalorder %s1012_s1, %s1008_s20 }
  0x20   :  { %p1015_p0 = por %p1014_p13, %p1013_p12 }
  0x22   :  { %p1016_p1 = pnand %p1015_p0, %p1009_p11 }
  0x24   :  { %1019 = shalt.err (!%p1016_p1)
}
  0x25   :  { %59 = dma.hbm_to_vmem [thread:$0]  %s1309_s3, 16, %s1187_s24, [#allocation10]  }
  0x26   :  { %s1144_s23 = smov [#allocation3]   ;;  %s1145_s26 = smov [#allocation8]  }
  0x27   :  { %s21_s25 = sshll.u32 %s1144_s23, 4  ;;  %s46_s27 = sshll.u32 %s1145_s26, 4  ;;  %s22_s25 = int_to_ptr.vmem [resolvable:$true] %s21_s25  ;;  %s47_s27 = int_to_ptr.vmem [resolvable:$true] %s46_s27 }
  0x28   :  { %s1020_s30 = scalar_lea.hbm %s1306_s0, 512 }
  0x29   :  { %p1021_p2 = scmp.ne.s32.totalorder %s1306_s0, %s1020_s30  ;;  %p1024_p3 = scmp.lt.u32.totalorder %s1020_s30, %s1306_s0 }
  0x2b   :  { %p1026_p4 = pnand %p1024_p3, %p1021_p2 }
  0x2d   :  { %1029 = shalt.err (!%p1026_p4)
}
  0x2e   :  { %s1030_s3 = scalar_lea.vmem %s22_s25, 512  ;;  %p1035_p6 = scmp.lt.s32.totalorder %s22_s25, %s22_s25 }
  0x2f   :  { %p1031_p5 = scmp.ne.s32.totalorder %s22_s25, %s1030_s3  ;;  %p1036_p7 = scmp.lt.s32.totalorder %s1030_s3, %s1030_s3 }
  0x31   :  { %p1037_p8 = por %p1036_p7, %p1035_p6 }
  0x33   :  { %p1038_p9 = pnand %p1037_p8, %p1031_p5 }
  0x35   :  { %1041 = shalt.err (!%p1038_p9)
}
  0x36   :  { %27 = dma.hbm_to_vmem [thread:$0]  %s1306_s0, 512, %s22_s25, [#allocation4], %s1142_s9, %s1142_s9, %s1143_s10  }
  0x37   :  { %s1042_s16 = scalar_lea.hbm %s1308_s2, 16 }
  0x38   :  { %p1043_p10 = scmp.ne.s32.totalorder %s1308_s2, %s1042_s16  ;;  %p1046_p11 = scmp.lt.u32.totalorder %s1042_s16, %s1308_s2 }
  0x3a   :  { %p1048_p12 = pnand %p1046_p11, %p1043_p10 }
  0x3c   :  { %1051 = shalt.err (!%p1048_p12)
}
  0x3d   :  { %s1052_s1 = scalar_lea.vmem %s47_s27, 16  ;;  %s1056_s21 = scalar_lea.vmem %s47_s27, 32 }
  0x3e   :  { %p1053_p13 = scmp.ne.s32.totalorder %s47_s27, %s1052_s1  ;;  %p1057_p0 = scmp.lt.s32.totalorder %s47_s27, %s47_s27 }
  0x3f   :  { %p1058_p1 = scmp.lt.s32.totalorder %s1056_s21, %s1052_s1 }
  0x41   :  { %p1059_p2 = por %p1058_p1, %p1057_p0 }
  0x43   :  { %p1060_p3 = pnand %p1059_p2, %p1053_p13 }
  0x45   :  { %1063 = shalt.err (!%p1060_p3)
}
  0x46   :  { %49 = dma.hbm_to_vmem [thread:$0]  %s1308_s2, 16, %s47_s27, [#allocation7]  }
  0x47   :  { %s1146_s23 = smov [#allocation11]   ;;  %s1147_s26 = smov [#allocation12]  }
  0x48   :  { %s66_s25 = sshll.u32 %s1146_s23, 4  ;;  %s75_s28 = sshll.u32 %s1147_s26, 4  ;;  %s67_s25 = int_to_ptr.vmem [resolvable:$true] %s66_s25  ;;  %s1249_s28 = int_to_ptr.vmem [resolvable:$true] %s75_s28 }
  0x49   :  { %s1064_s7 = scalar_lea.hbm %s1310_s4, 16 }
  0x4a   :  { %p1065_p4 = scmp.ne.s32.totalorder %s1310_s4, %s1064_s7  ;;  %p1068_p5 = scmp.lt.u32.totalorder %s1064_s7, %s1310_s4 }
  0x4c   :  { %p1070_p6 = pnand %p1068_p5, %p1065_p4 }
  0x4e   :  { %1073 = shalt.err (!%p1070_p6)
}
  0x4f   :  { %s1074_s2 = scalar_lea.vmem %s67_s25, 16  ;;  %s1078_s27 = scalar_lea.vmem %s67_s25, 32 }
  0x50   :  { %p1075_p7 = scmp.ne.s32.totalorder %s67_s25, %s1074_s2  ;;  %p1079_p8 = scmp.lt.s32.totalorder %s67_s25, %s67_s25 }
  0x51   :  { %p1080_p9 = scmp.lt.s32.totalorder %s1078_s27, %s1074_s2 }
  0x53   :  { %p1081_p10 = por %p1080_p9, %p1079_p8 }
  0x55   :  { %p1082_p11 = pnand %p1081_p10, %p1075_p7 }
  0x57   :  { %1085 = shalt.err (!%p1082_p11)
}
  0x58   :  { %69 = dma.hbm_to_vmem [thread:$0]  %s1310_s4, 16, %s67_s25, [#allocation10]  }
  0x59   :  { %s1086_s16 = scalar_lea.hbm %s1311_s5, 2048 }
  0x5a   :  { %p1087_p12 = scmp.ne.s32.totalorder %s1311_s5, %s1086_s16  ;;  %p1090_p13 = scmp.lt.u32.totalorder %s1086_s16, %s1311_s5 }
  0x5c   :  { %p1092_p0 = pnand %p1090_p13, %p1087_p12 }
  0x5e   :  { %1095 = shalt.err (!%p1092_p0)
}
  0x5f   :  { %s1096_s1 = scalar_lea.vmem %s1249_s28, 2048  ;;  %p1101_p2 = scmp.lt.s32.totalorder %s1249_s28, %s1249_s28 }
  0x60   :  { %p1097_p1 = scmp.ne.s32.totalorder %s1249_s28, %s1096_s1  ;;  %p1102_p3 = scmp.lt.s32.totalorder %s1096_s1, %s1096_s1 }
  0x62   :  { %p1103_p4 = por %p1102_p3, %p1101_p2 }
  0x64   :  { %p1104_p5 = pnand %p1103_p4, %p1097_p1 }
  0x66   :  { %1107 = shalt.err (!%p1104_p5)
}
  0x67   :  { %81 = dma.hbm_to_vmem [thread:$0]  %s1311_s5, 2048, %s1249_s28, [#allocation13], %s1142_s9, %s1142_s9, %s1143_s10  }
  0x68   :  { %1130 = dma.done.wait [#allocation4], 512  }
  0x69   :  { %1131 = vsyncadd [#allocation4], 4294966784 }
  0x6a   :  { %1132 = dma.done.wait [#allocation7], 6160  }
  0x6b   :  { %1133 = vsyncadd [#allocation7], 4294961136 }
  0x6c   :  { %1134 = dma.done.wait [#allocation10], 32  }
  0x6d   :  { %1135 = vsyncadd [#allocation10], 4294967264 }
  0x6e   :  { %1136 = dma.done.wait [#allocation13], 2048  }
  0x6f   :  { %1137 = vsyncadd [#allocation13], 4294965248  ;;  %v1148_v0 = vmov 0.0   ;;  %v171_v1 = vld [vmem:[#allocation6 + $0x80] sm:$0xff]  ;;  %v172_v2 = vld [vmem:[#allocation6 + $0x88] sm:$0xff]  ;;  %vm110_vm0 = vcmask 1040384  }
  0x70   :  { %100 = vst [vmem:[#allocation2] sm:$0x1] %v1148_v0  ;;  %101 = vst [vmem:[#allocation2 + $0x30] sm:$0x1] %v1148_v0  ;;  %v155_v3 = vld [vmem:[#allocation6] sm:$0xff]  ;;  %v842_v4 = vpack.c.bf16 %v172_v2, %v171_v1  ;;  %v156_v5 = vld [vmem:[#allocation6 + $0x8] sm:$0xff] }
  0x71   :  { %141 = vst [vmem:[#allocation2 + $0x2f] sm:$0x1] %v1148_v0  ;;  %142 = vst [vmem:[#allocation2 + $0x5f] sm:$0x1] %v1148_v0  ;;  %v173_v6 = vld [vmem:[#allocation6 + $0x90] sm:$0xff]  ;;  %v174_v7 = vld [vmem:[#allocation6 + $0x98] sm:$0xff]  ;;  %v844_v8 = vpack.c.bf16 %v156_v5, %v155_v3 }
  0x72   :  { %v846_v9 = vpack.c.bf16 %v174_v7, %v173_v6  ;;  %v187_v10 = vld [vmem:[#allocation6 + $0x100] sm:$0xff]  ;;  %v188_v11 = vld [vmem:[#allocation6 + $0x108] sm:$0xff]  ;;  %v157_v12 = vld [vmem:[#allocation6 + $0x10] sm:$0xff]  ;;  %843 = vmatprep.subr.bf16.mxu0 %v842_v4  ;;  %vm1150_vm1 = vmmov 0   ;;  %s1151_s5 = smov [#allocation14]  }
  0x73   :  { %v874_v13 = vpack.c.bf16 %v188_v11, %v187_v10  ;;  %v158_v14 = vld [vmem:[#allocation6 + $0x18] sm:$0xff]  ;;  %v175_v15 = vld [vmem:[#allocation6 + $0xa0] sm:$0xff]  ;;  %v176_v16 = vld [vmem:[#allocation6 + $0xa8] sm:$0xff]  ;;  %845 = vmatpush3.bf16.msra.mxu0 %v844_v8  ;;  %s619_s0 = sshll.u32 %s1151_s5, 4  ;;  %s620_s0 = int_to_ptr.vmem [resolvable:$true] %s619_s0 }
  0x74   :  { %v848_v17 = vpack.c.bf16 %v158_v14, %v157_v12  ;;  %v189_v18 = vld [vmem:[#allocation6 + $0x110] sm:$0xff]  ;;  %v190_v19 = vld [vmem:[#allocation6 + $0x118] sm:$0xff]  ;;  %847 = vmatprep.subr.bf16.mxu0 %v846_v9  ;;  %v850_v20 = vpack.c.bf16 %v176_v16, %v175_v15  ;;  %v159_v22 = vld [vmem:[#allocation6 + $0x20] sm:$0xff]  ;;  %s1108_s22 = scalar_lea.vmem %s620_s0, 512  ;;  %p1113_p7 = scmp.lt.s32.totalorder %s620_s0, %s620_s0 }
  0x75   :  { %875 = vmatprep.subr.bf16.mxu1 %v874_v13  ;;  %v878_v21 = vpack.c.bf16 %v190_v19, %v189_v18  ;;  %v160_v23 = vld [vmem:[#allocation6 + $0x28] sm:$0xff]  ;;  %v177_v24 = vld [vmem:[#allocation6 + $0xb0] sm:$0xff]  ;;  %v178_v25 = vld [vmem:[#allocation6 + $0xb8] sm:$0xff]  ;;  %p1109_p6 = scmp.ne.s32.totalorder %s620_s0, %s1108_s22  ;;  %p1114_p8 = scmp.lt.s32.totalorder %s1108_s22, %s1108_s22 }
  0x76   :  { %877 = vmatpush3.bf16.msra.mxu1 %v874_v13  ;;  %v191_v26 = vld [vmem:[#allocation6 + $0x120] sm:$0xff]  ;;  %v192_v27 = vld [vmem:[#allocation6 + $0x128] sm:$0xff]  ;;  %v852_v29 = vpack.c.bf16 %v160_v23, %v159_v22  ;;  %v193_v30 = vld [vmem:[#allocation6 + $0x130] sm:$0xff]  ;;  %v854_v32 = vpack.c.bf16 %v178_v25, %v177_v24 }
  0x77   :  { %879 = vmatprep.subr.bf16.mxu1 %v878_v21  ;;  %v882_v28 = vpack.c.bf16 %v192_v27, %v191_v26  ;;  %849 = vmatpush3.bf16.msra.mxu0 %v848_v17  ;;  %v194_v31 = vld [vmem:[#allocation6 + $0x138] sm:$0xff]  ;;  %v161_v33 = vld [vmem:[#allocation6 + $0x30] sm:$0xff]  ;;  %v179_v35 = vld [vmem:[#allocation6 + $0xc0] sm:$0xff]  ;;  %p1115_p9 = por %p1114_p8, %p1113_p7 }
  0x78   :  { %851 = vmatprep.subr.bf16.mxu0 %v850_v20  ;;  %v162_v34 = vld [vmem:[#allocation6 + $0x38] sm:$0xff]  ;;  %v180_v36 = vld [vmem:[#allocation6 + $0xc8] sm:$0xff]  ;;  %v886_v37 = vpack.c.bf16 %v194_v31, %v193_v30  ;;  %v195_v39 = vld [vmem:[#allocation6 + $0x140] sm:$0xff] }
  0x79   :  { %v856_v38 = vpack.c.bf16 %v162_v34, %v161_v33  ;;  %v196_v40 = vld [vmem:[#allocation6 + $0x148] sm:$0xff]  ;;  %v858_v41 = vpack.c.bf16 %v180_v36, %v179_v35  ;;  %v163_v42 = vld [vmem:[#allocation6 + $0x40] sm:$0xff]  ;;  %v181_v44 = vld [vmem:[#allocation6 + $0xd0] sm:$0xff]  ;;  %v1149_v33 = vmov 0.0|0.0   ;;  %p1116_p10 = pnand %p1115_p9, %p1109_p6 }
  0x7a   :  { %881 = vmatpush3.bf16.msra.mxu1 %v878_v21  ;;  %v164_v43 = vld [vmem:[#allocation6 + $0x48] sm:$0xff]  ;;  %v182_v45 = vld [vmem:[#allocation6 + $0xd8] sm:$0xff]  ;;  %v890_v46 = vpack.c.bf16 %v196_v40, %v195_v39  ;;  %v165_v47 = vld [vmem:[#allocation6 + $0x50] sm:$0xff] }
  0x7b   :  { %883 = vmatprep.subr.bf16.mxu1 %v882_v28  ;;  %853 = vmatpush3.bf16.msra.mxu0 %v852_v29  ;;  %v166_v48 = vld [vmem:[#allocation6 + $0x58] sm:$0xff]  ;;  %v197_v49 = vld [vmem:[#allocation6 + $0x150] sm:$0xff]  ;;  %v125_v50 = vld [vmem:[#allocation3] sm:$0xff]  ;;  %v860_v51 = vpack.c.bf16 %v164_v43, %v163_v42  ;;  %v862_v58 = vpack.c.bf16 %v182_v45, %v181_v44 }
  0x7c   :  { %855 = vmatprep.subr.bf16.mxu0 %v854_v32  ;;  %v183_v52 = vld [vmem:[#allocation6 + $0xe0] sm:$0xff]  ;;  %v184_v53 = vld [vmem:[#allocation6 + $0xe8] sm:$0xff]  ;;  %v198_v54 = vld [vmem:[#allocation6 + $0x158] sm:$0xff]  ;;  %274 = vmatprep.mubr.f32.mxu0 %v125_v50  ;;  %v111_v55 = vrot.slane %v125_v50, 7  ;;  %v864_v7 = vpack.c.bf16 %v166_v48, %v165_v47 }
  0x7d   :  { %v126_v56 = vld [vmem:[#allocation3 + $0x8] sm:$0xff]  ;;  %v127_v61 = vld [vmem:[#allocation3 + $0x10] sm:$0xff]  ;;  %v128_v1 = vld [vmem:[#allocation3 + $0x18] sm:$0xff]  ;;  %v894_v4 = vpack.c.bf16 %v198_v54, %v197_v49  ;;  %v866_v11 = vpack.c.bf16 %v184_v53, %v183_v52 }
  0x7e   :  { %885 = vmatpush3.bf16.msra.mxu1 %v882_v28  ;;  %v133_v57 = vld [vmem:[#allocation3 + $0x1] sm:$0xff]  ;;  %v134_v60 = vld [vmem:[#allocation3 + $0x9] sm:$0x7f]  ;;  %121 = vst [vmem:[#allocation2] sm:$0xfe] %v111_v55  ;;  %v114_v63 = vrot.slane %v127_v61, 7 }
  0x7f   :  { %887 = vmatprep.subr.bf16.mxu1 %v886_v37  ;;  %857 = vmatpush3.bf16.msra.mxu0 %v856_v38  ;;  %v103_v59 = vld [vmem:[#allocation3 + $0x8] sm:$0x7f]  ;;  %138 = vst [vmem:[#allocation2 + $0x28] sm:$0x7f] %v134_v60  ;;  %v135_v2 = vld [vmem:[#allocation3 + $0x11] sm:$0xff]  ;;  %v199_v8 = vld [vmem:[#allocation6 + $0x160] sm:$0xff] }
  0x80   :  { %859 = vmatprep.subr.bf16.mxu0 %v858_v41  ;;  %766 = vmatprep.mubr.f32.mxu1 %v133_v57  ;;  %v112_v62 = vrot.slane %v103_v59, 7  ;;  %v105_v3 = vld [vmem:[#allocation3 + $0x18] sm:$0x7f]  ;;  %v200_v9 = vld [vmem:[#allocation6 + $0x168] sm:$0xff]  ;;  %123 = vst [vmem:[#allocation2 + $0x30] sm:$0xfe] %v114_v63 }
  0x81   :  { %v115_v5 = vrot.slane %v105_v3, 7  ;;  %v136_v6 = vld [vmem:[#allocation3 + $0x19] sm:$0x7f]  ;;  %v167_v12 = vld [vmem:[#allocation6 + $0x60] sm:$0xff]  ;;  %v168_v13 = vld [vmem:[#allocation6 + $0x68] sm:$0xff]  ;;  %v898_v17 = vpack.c.bf16 %v200_v9, %v199_v8 }
  0x82   :  { %889 = vmatpush3.bf16.msra.mxu1 %v886_v37  ;;  %v113_v10 = vsel %vm110_vm0, %v111_v55, %v112_v62  ;;  %140 = vst [vmem:[#allocation2 + $0x58] sm:$0x7f] %v136_v6  ;;  %v185_v15 = vld [vmem:[#allocation6 + $0xf0] sm:$0xff]  ;;  %v186_v16 = vld [vmem:[#allocation6 + $0xf8] sm:$0xff]  ;;  %v868_v18 = vpack.c.bf16 %v168_v13, %v167_v12  ;;  %v380_v30 = vld [vmem:[#allocation12] sm:$0xff] }
  0x83   :  { %891 = vmatprep.subr.bf16.mxu1 %v890_v46  ;;  %861 = vmatpush3.bf16.msra.mxu0 %v860_v51  ;;  %v116_v14 = vsel %vm110_vm0, %v114_v63, %v115_v5  ;;  %v201_v19 = vld [vmem:[#allocation6 + $0x170] sm:$0xff]  ;;  %v202_v20 = vld [vmem:[#allocation6 + $0x178] sm:$0xff]  ;;  %v870_v21 = vpack.c.bf16 %v186_v16, %v185_v15  ;;  %v384_v37 = vld [vmem:[#allocation12 + $0x20] sm:$0xff] }
  0x84   :  { %863 = vmatprep.subr.bf16.mxu0 %v862_v58  ;;  %v169_v22 = vld [vmem:[#allocation6 + $0x70] sm:$0xff]  ;;  %v170_v23 = vld [vmem:[#allocation6 + $0x78] sm:$0xff]  ;;  %v902_v24 = vpack.c.bf16 %v202_v20, %v201_v19  ;;  %v388_v43 = vld [vmem:[#allocation12 + $0x40] sm:$0xff] }
  0x85   :  { %v872_v25 = vpack.c.bf16 %v170_v23, %v169_v22  ;;  %v143_v26 = vld [vmem:[#allocation2] sm:$0xff]  ;;  %v381_v31 = vld [vmem:[#allocation12 + $0x8] sm:$0xff]  ;;  %v382_v34 = vld [vmem:[#allocation12 + $0x10] sm:$0xff] }
  0x86   :  { %893 = vmatpush3.bf16.msra.mxu1 %v890_v46  ;;  %v148_v27 = vld [vmem:[#allocation2 + $0x28] sm:$0xff]  ;;  %v907_v32 = vpack.c.bf16 %v381_v31, %v380_v30  ;;  %v383_v35 = vld [vmem:[#allocation12 + $0x18] sm:$0xff]  ;;  %v386_v40 = vld [vmem:[#allocation12 + $0x30] sm:$0xff] }
  0x87   :  { %895 = vmatprep.subr.bf16.mxu1 %v894_v4  ;;  %865 = vmatpush3.bf16.msra.mxu0 %v864_v7  ;;  %v149_v29 = vld [vmem:[#allocation2 + $0x30] sm:$0xff]  ;;  %v910_v36 = vpack.c.bf16 %v383_v35, %v382_v34  ;;  %v387_v41 = vld [vmem:[#allocation12 + $0x38] sm:$0xff]  ;;  %v392_v49 = vld [vmem:[#allocation12 + $0x60] sm:$0xff] }
  0x88   :  { %867 = vmatprep.subr.bf16.mxu0 %v866_v11  ;;  %v385_v38 = vld [vmem:[#allocation12 + $0x28] sm:$0xff]  ;;  %v916_v42 = vpack.c.bf16 %v387_v41, %v386_v40  ;;  %v390_v46 = vld [vmem:[#allocation12 + $0x50] sm:$0xff]  ;;  %v391_v47 = vld [vmem:[#allocation12 + $0x58] sm:$0xff] }
  0x89   :  { %v154_v28 = vld [vmem:[#allocation2 + $0x58] sm:$0xff]  ;;  %v913_v39 = vpack.c.bf16 %v385_v38, %v384_v37  ;;  %v389_v44 = vld [vmem:[#allocation12 + $0x48] sm:$0xff]  ;;  %v922_v48 = vpack.c.bf16 %v391_v47, %v390_v46  ;;  %v634_v57 = vld [vmem:[#allocation8] ss:$0 sm:$0xff] }
  0x8a   :  { %897 = vmatpush3.bf16.msra.mxu1 %v894_v4  ;;  %v919_v45 = vpack.c.bf16 %v389_v44, %v388_v43  ;;  %v393_v50 = vld [vmem:[#allocation12 + $0x68] sm:$0xff]  ;;  %v394_v52 = vld [vmem:[#allocation12 + $0x70] sm:$0xff]  ;;  %v395_v53 = vld [vmem:[#allocation12 + $0x78] sm:$0xff] }
  0x8b   :  { %899 = vmatprep.subr.bf16.mxu1 %v898_v17  ;;  %869 = vmatpush3.bf16.msra.mxu0 %v868_v18  ;;  %v925_v51 = vpack.c.bf16 %v393_v50, %v392_v49  ;;  %v928_v54 = vpack.c.bf16 %v395_v53, %v394_v52 }
  0x8c   :  { %871 = vmatprep.subr.bf16.mxu0 %v870_v21 }
  0x8e   :  { %901 = vmatpush3.bf16.msra.mxu1 %v898_v17 }
  0x8f   :  { %903 = vmatprep.subr.bf16.mxu1 %v902_v24  ;;  %873 = vmatpush3.bf16.msra.mxu0 %v872_v25  ;;  %v475_v25 = vlaneseq }
  0x90   :  { %906 = vmatprep.subr.bf16.mxu0 %v1149_v33 }
  0x92   :  { %905 = vmatpush3.bf16.msra.mxu1 %v902_v24  ;;  %275 = vmatmul.mubr.f32.vlgmr.msra.gmra.mrb[0].mxu0 %v143_v26  ;;  %v476_v26 = vshrl.u32 %v475_v25, 7 }
  0x93   :  { %279 = vmatprep.mubr.f32.mxu0 %v126_v56  ;;  %930 = vmatprep.subr.bf16.mxu1 %v1149_v33 }
  0x94   :  { %908 = vmatpush3.bf16.msra.mxu0 %v907_v32 }
  0x95   :  { %767 = vmatmul.mubr.f32.vlgmr.msra.gmra.mrb[0].mxu1 %v148_v27  ;;  %909 = vmatprep.subr.bf16.mxu0 %v1149_v33  ;;  %v477_v27 = vsub.s32 0, %v476_v26 }
  0x96   :  { %769 = vmatprep.mubr.f32.mxu1 %v135_v2  ;;  %280 = vmatmul.mubr.f32.gmra.mrb[2].mxu0 %v113_v10 }
  0x97   :  { %284 = vmatprep.mubr.f32.mxu0 %v127_v61  ;;  %932 = vmatpush3.bf16.msra.mxu1 %v907_v32 }
  0x98   :  { %933 = vmatprep.subr.bf16.mxu1 %v1149_v33  ;;  %911 = vmatpush3.bf16.msra.mxu0 %v910_v36 }
  0x99   :  { %770 = vmatmul.mubr.f32.gmra.mrb[2].mxu1 %v154_v28  ;;  %912 = vmatprep.subr.bf16.mxu0 %v1149_v33 }
  0x9a   :  { %285 = vmatmul.mubr.f32.gmra.mrb[4].mxu0 %v149_v29  ;;  %839 = vmatprep.mubr.msk.f32.mxu1 %vm1150_vm1, %v1148_v0 }
  0x9b   :  { %289 = vmatprep.mubr.f32.mxu0 %v128_v1  ;;  %935 = vmatpush3.bf16.msra.mxu1 %v910_v36 }
  0x9c   :  { %936 = vmatprep.subr.bf16.mxu1 %v1149_v33  ;;  %914 = vmatpush3.bf16.msra.mxu0 %v913_v39 }
  0x9d   :  { %915 = vmatprep.subr.bf16.mxu0 %v1149_v33 }
  0x9e   :  { %290 = vmatmul.mubr.f32.gmra.mrb[6].mxu0 %v116_v14 }
  0x9f   :  { %938 = vmatpush3.bf16.msra.mxu1 %v913_v39  ;;  %804 = vmatprep.mubr.msk.f32.mxu0 %vm1150_vm1, %v1148_v0 }
  0xa0   :  { %939 = vmatprep.subr.bf16.mxu1 %v1149_v33  ;;  %917 = vmatpush3.bf16.msra.mxu0 %v916_v42 }
  0xa1   :  { %918 = vmatprep.subr.bf16.mxu0 %v1149_v33 }
  0xa3   :  { %941 = vmatpush3.bf16.msra.mxu1 %v916_v42 }
  0xa4   :  { %942 = vmatprep.subr.bf16.mxu1 %v1149_v33  ;;  %920 = vmatpush3.bf16.msra.mxu0 %v919_v45 }
  0xa5   :  { %921 = vmatprep.subr.bf16.mxu0 %v1149_v33 }
  0xa7   :  { %944 = vmatpush3.bf16.msra.mxu1 %v919_v45 }
  0xa8   :  { %945 = vmatprep.subr.bf16.mxu1 %v1149_v33  ;;  %923 = vmatpush3.bf16.msra.mxu0 %v922_v48 }
  0xa9   :  { %924 = vmatprep.subr.bf16.mxu0 %v1149_v33 }
  0xab   :  { %947 = vmatpush3.bf16.msra.mxu1 %v922_v48 }
  0xac   :  { %948 = vmatprep.subr.bf16.mxu1 %v1149_v33  ;;  %926 = vmatpush3.bf16.msra.mxu0 %v925_v51 }
  0xad   :  { %927 = vmatprep.subr.bf16.mxu0 %v1149_v33 }
  0xaf   :  { %950 = vmatpush3.bf16.msra.mxu1 %v925_v51  ;;  %v567_v51 = vld [vmem:[#allocation9] sm:$0x1] }
  0xb0   :  { %951 = vmatprep.subr.bf16.mxu1 %v1149_v33  ;;  %929 = vmatpush3.bf16.msra.mxu0 %v928_v54 }
  0xb3   :  { %953 = vmatpush3.bf16.msra.mxu1 %v928_v54 }
 0x165   :  { %v668_v55 = vpop.f32.mrb[0].mxu0 }
 0x166   :  { %v669_v56 = vpop.f32.mrb[1].mxu0 }
 0x167   :  { %v670_v58 = vadd.f32 %v669_v56, %v668_v55  ;;  %v635_v55 = vld [vmem:[#allocation11] ss:$0 sm:$0xff] }
 0x168   :  { %v768_v59 = vpop.f32.mrb[0].mxu1 }
 0x169   :  { %v361_v60 = vpop.f32.mrb[1].mxu1  ;;  %v671_v61 = vpop.f32.mrb[2].mxu0  ;;  %v277_v62 = vadd.f32 %v670_v58, %v634_v57 }
 0x16a   :  { %v672_v63 = vpop.f32.mrb[3].mxu0 }
 0x16b   :  { %v673_v1 = vadd.f32 %v672_v63, %v671_v61  ;;  %v362_v2 = vadd.f32 %v361_v60, %v277_v62 }
 0x16c   :  { %v771_v3 = vpop.f32.mrb[2].mxu1 }
 0x16d   :  { %v371_v4 = vpop.f32.mrb[3].mxu1  ;;  %v282_v5 = vadd.f32 %v673_v1, %v634_v57  ;;  %v674_v6 = vpop.f32.mrb[4].mxu0 }
 0x16e   :  { %v675_v7 = vpop.f32.mrb[5].mxu0 }
 0x16f   :  { %v367_v8 = vadd.f32 %v768_v59, %v282_v5  ;;  %v676_v9 = vadd.f32 %v675_v7, %v674_v6 }
 0x171   :  { %v677_v10 = vpop.f32.mrb[6].mxu0  ;;  %v287_v0 = vadd.f32 %v676_v9, %v634_v57  ;;  %v396_v14 = vadd.f32 %v367_v8, %v362_v2 }
 0x172   :  { %v678_v11 = vpop.f32.mrb[7].mxu0 }
 0x173   :  { %v679_v12 = vadd.f32 %v678_v11, %v677_v10  ;;  %v372_v13 = vadd.f32 %v371_v4, %v287_v0 }
 0x175   :  { %v292_v15 = vadd.f32 %v679_v12, %v634_v57  ;;  %v397_v17 = vadd.f32 %v396_v14, %v372_v13 }
 0x177   :  { %v377_v16 = vadd.f32 %v771_v3, %v292_v15 }
 0x179   :  { %v398_v18 = vadd.f32 %v397_v17, %v377_v16 }
 0x17b   :  { %v399_v19 = vrot.slane %v398_v18, 4 }
 0x17d   :  { %v400_v20 = vadd.f32 %v399_v19, %v398_v18 }
 0x17f   :  { %v401_v21 = vrot.slane %v400_v20, 2 }
 0x181   :  { %v402_v22 = vadd.f32 %v401_v21, %v400_v20 }
 0x183   :  { %v403_v23 = vrot.slane %v402_v22, 1 }
 0x185   :  { %v404_v24 = vadd.f32 %v403_v23, %v402_v22 }
 0x187   :  { %805 = vmatmul.mubr.f32.vlgmr.msra.gmra.mrb[8].mxu0 %v404_v24 }
 0x25a   :  { %v471_v28 = vpop.f32.mrb[8].mxu0 }
 0x25b   :  { %v478_v29 = vrot.slane %v471_v28, %v477_v27  ;;  %v806_v30 = vpop.f32.mrb[9].mxu0 }
 0x25d   :  { %v479_v31 = vsub.f32 %v362_v2, %v478_v29  ;;  %v480_v32 = vsub.f32 %v367_v8, %v478_v29  ;;  %v481_v33 = vsub.f32 %v372_v13, %v478_v29  ;;  %v482_v34 = vsub.f32 %v377_v16, %v478_v29 }
 0x25f   :  { %v483_v35 = vmul.f32 %v479_v31, %v479_v31  ;;  %v484_v36 = vmul.f32 %v480_v32, %v480_v32  ;;  %v485_v37 = vmul.f32 %v481_v33, %v481_v33  ;;  %v486_v39 = vmul.f32 %v482_v34, %v482_v34 }
 0x261   :  { %v487_v38 = vadd.f32 %v484_v36, %v483_v35 }
 0x263   :  { %v488_v40 = vadd.f32 %v487_v38, %v485_v37 }
 0x265   :  { %v489_v41 = vadd.f32 %v488_v40, %v486_v39 }
 0x267   :  { %v490_v42 = vrot.slane %v489_v41, 4 }
 0x269   :  { %v491_v43 = vadd.f32 %v490_v42, %v489_v41 }
 0x26b   :  { %v492_v44 = vrot.slane %v491_v43, 2 }
 0x26d   :  { %v493_v45 = vadd.f32 %v492_v44, %v491_v43 }
 0x26f   :  { %v494_v46 = vrot.slane %v493_v45, 1 }
 0x271   :  { %v495_v47 = vadd.f32 %v494_v46, %v493_v45 }
 0x273   :  { %840 = vmatmul.mubr.f32.vlgmr.msra.gmra.mrb[4].mxu1 %v495_v47 }
 0x346   :  { %v562_v48 = vpop.f32.mrb[4].mxu1 }
 0x347   :  { %v563_v49 = vadd.f32 1e-05, %v562_v48  ;;  %v841_v50 = vpop.f32.mrb[5].mxu1 }
 0x349   :  { %966 = vrsqrt.f32 %v563_v49 }
 0x353   :  { %v967_v52 = vpop.eup %966 }
 0x354   :  { %v568_v53 = vmul.f32 %v967_v52, %v567_v51 }
 0x356   :  { %v573_v54 = vrot.slane %v568_v53, %v477_v27 }
 0x358   :  { %v575_v56 = vmul.f32 %v573_v54, %v479_v31  ;;  %v576_v57 = vmul.f32 %v573_v54, %v480_v32  ;;  %v577_v58 = vmul.f32 %v573_v54, %v481_v33  ;;  %v578_v59 = vmul.f32 %v573_v54, %v482_v34 }
 0x35a   :  { %v586_v60 = vadd.f32 %v635_v55, %v575_v56  ;;  %v587_v61 = vadd.f32 %v635_v55, %v576_v57  ;;  %v588_v62 = vadd.f32 %v635_v55, %v577_v58  ;;  %v589_v63 = vadd.f32 %v635_v55, %v578_v59 }
 0x35c   :  { %v594_v1 = vmul.f32 0.70710677, %v586_v60  ;;  %v595_v2 = vmul.f32 0.70710677, %v587_v61  ;;  %v596_v3 = vmul.f32 0.70710677, %v588_v62 }
 0x35d   :  { %v597_v4 = vmul.f32 0.70710677, %v589_v63  ;;  %v590_v7 = vmul.f32 0.5, %v586_v60  ;;  %v591_v10 = vmul.f32 0.5, %v587_v61  ;;  %v592_v12 = vmul.f32 0.5, %v588_v62 }
 0x35e   :  { %968 = verf.f32 %v594_v1  ;;  %v593_v15 = vmul.f32 0.5, %v589_v63 }
 0x35f   :  { %970 = verf.f32 %v595_v2 }
 0x360   :  { %972 = verf.f32 %v596_v3 }
 0x361   :  { %974 = verf.f32 %v597_v4 }
 0x368   :  { %v969_v5 = vpop.eup %968 }
 0x369   :  { %v971_v6 = vpop.eup %970  ;;  %v602_v8 = vadd.f32 1.0, %v969_v5 }
 0x36a   :  { %v973_v9 = vpop.eup %972  ;;  %v603_v0 = vadd.f32 1.0, %v971_v6 }
 0x36b   :  { %v975_v11 = vpop.eup %974  ;;  %v604_v13 = vadd.f32 1.0, %v973_v9  ;;  %v606_v14 = vmul.f32 %v602_v8, %v590_v7 }
 0x36c   :  { %v605_v16 = vadd.f32 1.0, %v975_v11  ;;  %v607_v17 = vmul.f32 %v603_v0, %v591_v10 }
 0x36d   :  { %v608_v18 = vmul.f32 %v604_v13, %v592_v12  ;;  %610 = vst [vmem:[#allocation14] sm:$0xff] %v606_v14 }
 0x36e   :  { %v609_v19 = vmul.f32 %v605_v16, %v593_v15  ;;  %611 = vst [vmem:[#allocation14 + $0x8] sm:$0xff] %v607_v17 }
 0x36f   :  { %612 = vst [vmem:[#allocation14 + $0x10] sm:$0xff] %v608_v18 }
 0x370   :  { %613 = vst [vmem:[#allocation14 + $0x18] sm:$0xff] %v609_v19 }
 0x371   :  { %1119 = shalt.err (!%p1116_p10)
}
 0x372   :  { %s1120_s26 = scalar_lea.hbm %s1312_s6, 512 }
 0x373   :  { %p1121_p11 = scmp.ne.s32.totalorder %s1312_s6, %s1120_s26  ;;  %p1124_p12 = scmp.lt.u32.totalorder %s1120_s26, %s1312_s6 }
 0x375   :  { %p1126_p13 = pnand %p1124_p12, %p1121_p11 }
 0x377   :  { %1129 = shalt.err (!%p1126_p13)
}
 0x378   :  { %625 = dma.vmem_to_hbm [thread:$0]  %s620_s0, 512, %s1312_s6, [#allocation5], %s1142_s9, %s1142_s9, %s1143_s10  }
 0x379   :  { %1138 = dma.done.wait [#allocation5], 512  }
 0x37a   :  { %1139 = vsyncadd [#allocation5], 4294966784 }
 0x37b   :  { %629 = vsyncpa [#allocation4], 1 }
 0x37c   :  { %630 = vsyncpa [#allocation7], 1 }
 0x37d   :  { %631 = vsyncpa [#allocation10], 1 }
 0x37e   :  { %632 = vsyncpa [#allocation13], 1 }
 0x37f   :  { %633 = vsyncpa [#allocation5], 1 }

</bundles_post_ra>
